<compile_context>
chip_gen: v5e
topology: v5e:2x2
jax: 0.10.0
libtpu: 0.0.40
codegen_flags: <defaults>
</compile_context>

<pallas_src>
import functools

import jax
import jax.numpy as jnp
from jax import lax
from jax.experimental import pallas as pl
from jax.experimental.pallas import tpu as pltpu

EPS = 1e-5        # PyTorch InstanceNorm default eps
NEG_SLOPE = 0.01  # MONAI dynunet LeakyReLU negative_slope


# ---------------------------------------------------------------------------
# Pallas kernel: one batch sample — fused conv (k*k shifted matmuls on a
# row-flattened padded image) + dyn QKV gating + InstanceNorm + LeakyReLU.
# ---------------------------------------------------------------------------
def _fused_dyconv_in_lrelu_kernel(*refs, k, Wp, Lout, store_off, inv_count,
                                  eps, neg_slope, dyn):
    if dyn:
        x_ref, w_ref, mask_ref, qv_ref, kk_ref, out_ref = refs
    else:
        x_ref, w_ref, mask_ref, out_ref = refs

    cout = out_ref.shape[1]
    l2 = out_ref.shape[2]
    m = mask_ref[...]                                    # (1, Lout) f32 valid-col mask

    # conv: sum over k*k taps of (Cout, Cin) @ (Cin, Lout) bf16 matmuls (MXU),
    # f32 accumulation; shifted windows come from lane-offset loads of the
    # flattened padded image — no im2col array is ever built.
    acc = None
    for tap in range(k * k):
        dh, dw = tap // k, tap % k
        off = dh * Wp + dw
        xs = x_ref[0, :, pl.ds(off, Lout)]               # (Cin, Lout) bf16
        if dyn:
            # fold att_q (per input channel) * att_v (per tap) into activations
            xs = (xs.astype(jnp.float32) * qv_ref[0, tap]).astype(jnp.bfloat16)
        contrib = jnp.dot(w_ref[tap], xs, preferred_element_type=jnp.float32)
        acc = contrib if acc is None else acc + contrib  # (Cout, Lout) f32

    if dyn:
        acc = acc * kk_ref[0]                            # att_k, applied pre-norm (exact)

    # InstanceNorm over the valid spatial positions only (biased var, eps in sqrt)
    mean = jnp.sum(acc * m, axis=1, keepdims=True) * inv_count      # (Cout, 1)
    cent = (acc - mean) * m                              # garbage columns -> 0
    var = jnp.sum(cent * cent, axis=1, keepdims=True) * inv_count
    y = cent * lax.rsqrt(var + eps)                      # affine=False (PyTorch default)
    y = jnp.where(y > 0.0, y, neg_slope * y)             # LeakyReLU (0 stays 0)

    # Store in the padded row-flattened layout the next conv consumes:
    # output pixel (h, w) lands at flat index pad*(Wp+1) + h*Wp + w; the masked
    # garbage columns provide most of the zero pad ring, head/tail are zeroed.
    od = out_ref.dtype
    if store_off > 0:
        out_ref[0, :, pl.ds(0, store_off)] = jnp.zeros((cout, store_off), od)
    out_ref[0, :, pl.ds(store_off, Lout)] = y.astype(od)
    tail = l2 - store_off - Lout
    if tail > 0:
        out_ref[0, :, pl.ds(store_off + Lout, tail)] = jnp.zeros((cout, tail), od)


def fused_conv_in_lrelu(x_flat, w_taps, mask, qv=None, kk=None, *,
                        H, W, k, out_dtype):
    """x_flat: (N, Cin, L) row-flattened zero-padded image (bf16);
    w_taps: (k*k, Cout, Cin) shared conv weight (bf16);
    mask: (1, H*Wp) valid-column mask (f32);
    qv (N, k*k, Cin, 1) / kk (N, Cout, 1): optional per-sample dynamic gates.
    Returns (N, Cout, L) conv+IN+LeakyReLU result in the same padded layout."""
    N, Cin, L = x_flat.shape
    KK, Cout, Cin_w = w_taps.shape
    assert KK == k * k and Cin_w == Cin
    pad = (k - 1) // 2
    Wp = W + 2 * pad
    Lout = H * Wp
    L2 = (H + k) * Wp
    assert L == L2, (L, L2)
    dyn = qv is not None

    kernel = functools.partial(
        _fused_dyconv_in_lrelu_kernel,
        k=k, Wp=Wp, Lout=Lout, store_off=pad * Wp + pad,
        inv_count=1.0 / float(H * W), eps=EPS, neg_slope=NEG_SLOPE, dyn=dyn)

    in_specs = [
        pl.BlockSpec((1, Cin, L), lambda n: (n, 0, 0)),      # per-sample input slab
        pl.BlockSpec((KK, Cout, Cin), lambda n: (0, 0, 0)),  # shared weight (VMEM-resident)
        pl.BlockSpec((1, Lout), lambda n: (0, 0)),           # valid-column mask
    ]
    args = [x_flat, w_taps, mask]
    if dyn:
        in_specs += [
            pl.BlockSpec((1, KK, Cin, 1), lambda n: (n, 0, 0, 0)),
            pl.BlockSpec((1, Cout, 1), lambda n: (n, 0, 0)),
        ]
        args += [qv, kk]

    # Generous but bounded VMEM budget (tiny here; matters once tiles grow).
    blk_bytes = (Cin * L * x_flat.dtype.itemsize
                 + KK * Cout * Cin * w_taps.dtype.itemsize
                 + Lout * 4
                 + Cout * L2 * jnp.dtype(out_dtype).itemsize
                 + Cout * Lout * 4)
    vmem_limit = int(min(64 * 2**20, max(4 * 2**20, 8 * blk_bytes)))

    return pl.pallas_call(
        kernel,
        out_shape=jax.ShapeDtypeStruct((N, Cout, L2), out_dtype),
        grid=(N,),
        in_specs=in_specs,
        out_specs=pl.BlockSpec((1, Cout, L2), lambda n: (n, 0, 0)),
        compiler_params=pltpu.CompilerParams(
            dimension_semantics=("parallel",),
            vmem_limit_bytes=vmem_limit),
    )(*args)


# ---------------------------------------------------------------------------
# Dynamic QKV gates (tiny SE MLP, plain JAX — negligible compute).
# ---------------------------------------------------------------------------
def _dyn_qkv_attention(x, params, dy_att_blocks):
    se = jnp.mean(x, axis=(2, 3))                         # (N, Cin) squeeze
    hidden = jax.nn.relu(se @ params["fc_w"] + params["fc_b"])
    att_q = jax.nn.sigmoid(hidden @ params["q_w"] + params["q_b"])
    att_k = jax.nn.sigmoid(hidden @ params["k_w"] + params["k_b"])
    att_v = jax.nn.sigmoid(hidden @ params["v_w"] + params["v_b"])
    if not dy_att_blocks[0]:
        att_q = jnp.ones_like(att_q)
    if not dy_att_blocks[1]:
        att_k = jnp.ones_like(att_k)
    if not dy_att_blocks[2]:
        att_v = jnp.ones_like(att_v)
    return att_q, att_k, att_v


def init_params(key, in_channels, out_channels, kernel_size, reduction):
    k = kernel_size
    hidden = max(1, int(in_channels * reduction))
    keys = jax.random.split(key, 6)
    s = 0.1
    # InstanceNorm is affine=False (PyTorch / MONAI "instance" default): no gamma/beta.
    return {
        "conv1_w": s * jax.random.normal(keys[0], (out_channels, in_channels, k, k), jnp.float32),
        "conv2_w": s * jax.random.normal(keys[1], (out_channels, out_channels, k, k), jnp.float32),
        "fc_w": s * jax.random.normal(keys[2], (in_channels, hidden), jnp.float32),
        "fc_b": jnp.zeros((hidden,), jnp.float32),
        "q_w": s * jax.random.normal(keys[3], (hidden, in_channels), jnp.float32),
        "q_b": jnp.zeros((in_channels,), jnp.float32),
        "k_w": s * jax.random.normal(keys[4], (hidden, out_channels), jnp.float32),
        "k_b": jnp.zeros((out_channels,), jnp.float32),
        "v_w": s * jax.random.normal(keys[5], (hidden, k * k), jnp.float32),
        "v_b": jnp.zeros((k * k,), jnp.float32),
    }


# ---------------------------------------------------------------------------
# Forward: two fused pallas_calls, one layout conversion at the module boundary.
# ---------------------------------------------------------------------------
@functools.partial(jax.jit, static_argnames=("kernel_size", "stride", "dy_att_blocks"))
def unetr_basic_block_dyqkv_forward(x, params, *, kernel_size=3, stride=1,
                                    dy_att_blocks=(1, 1, 1)):
    """x: (N, Cin, H, W) NCHW -> (N, Cout, H, W) NCHW."""
    if stride != 1:
        # TODO(synk): strided first conv not supported by the fused flat-row path.
        raise NotImplementedError("fused path supports stride=1 only")
    if kernel_size % 2 != 1:
        raise NotImplementedError("odd kernel_size only")
    N, Cin, H, W = x.shape
    k = kernel_size
    Cout = params["conv1_w"].shape[0]
    pad = (k - 1) // 2
    Wp = W + 2 * pad
    Lout = H * Wp
    L = (H + k) * Wp          # pad rows on top, pad+1 on bottom (flat-shift overrun)

    # --- per-sample dynamic QKV gates ------------------------------------------
    att_q, att_k, att_v = _dyn_qkv_attention(x, params, dy_att_blocks)
    qv = (att_q[:, None, :] * att_v[:, :, None])[..., None]       # (N, k*k, Cin, 1)
    kk = att_k[:, :, None]                                        # (N, Cout, 1)

    # valid-column mask of the row-flattened padded layout
    mask = (jnp.arange(Lout) % Wp < W).astype(jnp.float32)[None, :]

    # --- block 1: dynamic conv + InstanceNorm + LeakyReLU ----------------------
    xpad = jnp.pad(x, ((0, 0), (0, 0), (pad, pad + 1), (pad, pad)))
    x1 = xpad.reshape(N, Cin, L).astype(jnp.bfloat16)
    w1 = params["conv1_w"].transpose(2, 3, 0, 1).reshape(k * k, Cout, Cin)
    y1 = fused_conv_in_lrelu(x1, w1.astype(jnp.bfloat16), mask, qv, kk,
                             H=H, W=W, k=k, out_dtype=jnp.bfloat16)

    # --- block 2: static conv + InstanceNorm + LeakyReLU -----------------------
    # y1 is already in the padded row-flattened layout block 2 expects:
    # no transpose / re-pad / repack between the two pallas_calls.
    w2 = params["conv2_w"].transpose(2, 3, 0, 1).reshape(k * k, Cout, Cout)
    y2 = fused_conv_in_lrelu(y1, w2.astype(jnp.bfloat16), mask,
                             H=H, W=W, k=k, out_dtype=jnp.float32)

    # single layout conversion at the module boundary: padded flat -> NCHW interior
    out = y2.reshape(N, Cout, H + k, Wp)[:, :, pad:pad + H, pad:pad + W]
    return out


# ---------------------------------------------------------------------------
# Pure-JAX reference (same semantics; operands pre-quantized to bf16 to match
# the kernel's intended MXU precision; all math in f32).
# ---------------------------------------------------------------------------
def _instance_norm_lrelu(y):
    mean = jnp.mean(y, axis=(2, 3), keepdims=True)
    var = jnp.mean((y - mean) ** 2, axis=(2, 3), keepdims=True)
    yn = (y - mean) * lax.rsqrt(var + EPS)
    return jnp.where(yn > 0.0, yn, NEG_SLOPE * yn)


def reference_forward(x, params, *, kernel_size=3, dy_att_blocks=(1, 1, 1)):
    k = kernel_size
    N, Cin, H, W = x.shape
    pad = (k - 1) // 2
    q16 = lambda a: a.astype(jnp.bfloat16).astype(jnp.float32)
    att_q, att_k, att_v = _dyn_qkv_attention(x, params, dy_att_blocks)
    w_dyn = (q16(params["conv1_w"])[None]
             * att_q[:, None, :, None, None]
             * att_k[:, :, None, None, None]
             * att_v.reshape(N, 1, 1, k, k))
    dn = ("NCHW", "OIHW", "NCHW")
    conv1 = lambda xi, wi: lax.conv_general_dilated(
        xi[None], wi, (1, 1), [(pad, pad), (pad, pad)], dimension_numbers=dn)[0]
    y1 = _instance_norm_lrelu(jax.vmap(conv1)(q16(x), w_dyn))
    y2 = lax.conv_general_dilated(q16(y1), q16(params["conv2_w"]), (1, 1),
                                  [(pad, pad), (pad, pad)], dimension_numbers=dn)
    return _instance_norm_lrelu(y2)


if __name__ == "__main__":
    # spatial_dims=2, in_channels=4, out_channels=8, kernel_size=3, stride=1,
    # norm_name="instance", dyAttBlocks=(1,1,1), AllLayers=False, reduction=0.25
    key = jax.random.PRNGKey(0)
    kx, kp = jax.random.split(key)
    N, Cin, H, W = 2, 4, 16, 16
    Cout, ksz, stride = 8, 3, 1

    x = jax.random.normal(kx, (N, Cin, H, W), jnp.float32)   # NCHW, as in PyTorch
    params = init_params(kp, Cin, Cout, ksz, reduction=0.25)

    out = unetr_basic_block_dyqkv_forward(
        x, params, kernel_size=ksz, stride=stride, dy_att_blocks=(1, 1, 1))
    out = jax.block_until_ready(out)

    assert out.shape == (N, Cout, H, W), out.shape
    assert bool(jnp.all(jnp.isfinite(out)))

    # correctness vs. pure-JAX reference (gap dominated by the intended bf16
    # rounding of the gated activations and the bf16 block-1 intermediate)
    ref = reference_forward(x, params, kernel_size=ksz, dy_att_blocks=(1, 1, 1))
    max_err = float(jnp.max(jnp.abs(out - ref)))
    assert max_err < 0.15, max_err

    print("KERNEL_OK")
</pallas_src>

<mosaic_0001>
module attributes {stable_mosaic.version = 11 : i64} {
  func.func @_fused_dyconv_in_lrelu_kernel(%arg0: i32, %arg1: memref<1x4x342xbf16, #tpu.memory_space<vmem>>, %arg2: memref<9x8x4xbf16, #tpu.memory_space<vmem>>, %arg3: memref<1x288xf32, #tpu.memory_space<vmem>>, %arg4: memref<1x9x4x1xf32, #tpu.memory_space<vmem>>, %arg5: memref<1x8x1xf32, #tpu.memory_space<vmem>>, %arg6: memref<1x8x342xbf16, #tpu.memory_space<vmem>>) attributes {dimension_semantics = [#tpu.dimension_semantics<parallel>], iteration_bounds = array<i64: 2>, scalar_prefetch = 0 : i64, scratch_operands = 0 : i64, tpu.core_type = #tpu.core_type<tc>, window_params = [{transform_indices = @transform_0, window_bounds = array<i64: 1, 4, 342>}, {pipeline_mode = #tpu.pipeline_mode<synchronous>, transform_indices = @transform_1, window_bounds = array<i64: 9, 8, 4>}, {pipeline_mode = #tpu.pipeline_mode<synchronous>, transform_indices = @transform_2, window_bounds = array<i64: 1, 288>}, {transform_indices = @transform_3, window_bounds = array<i64: 1, 9, 4, 1>}, {transform_indices = @transform_4, window_bounds = array<i64: 1, 8, 1>}, {transform_indices = @transform_5, window_bounds = array<i64: 1, 8, 342>}]} {
    %c0 = arith.constant 0 : index
    %c0_0 = arith.constant 0 : index
    %0 = vector.load %arg3[%c0, %c0_0] : memref<1x288xf32, #tpu.memory_space<vmem>>, vector<1x288xf32>
    %c0_1 = arith.constant 0 : index
    %c0_2 = arith.constant 0 : index
    %c0_3 = arith.constant 0 : index
    %1 = vector.load %arg1[%c0_1, %c0_2, %c0_3] : memref<1x4x342xbf16, #tpu.memory_space<vmem>>, vector<1x4x288xbf16>
    %2 = vector.shape_cast %1 : vector<1x4x288xbf16> to vector<4x288xbf16>
    %3 = arith.extf %2 : vector<4x288xbf16> to vector<4x288xf32>
    %c0_4 = arith.constant 0 : index
    %c0_5 = arith.constant 0 : index
    %c0_6 = arith.constant 0 : index
    %c0_7 = arith.constant 0 : index
    %4 = vector.load %arg4[%c0_4, %c0_5, %c0_6, %c0_7] : memref<1x9x4x1xf32, #tpu.memory_space<vmem>>, vector<1x1x4x1xf32>
    %5 = vector.shape_cast %4 : vector<1x1x4x1xf32> to vector<4x1xf32>
    %6 = vector.broadcast %5 : vector<4x1xf32> to vector<4x288xf32>
    %7 = arith.mulf %3, %6 : vector<4x288xf32>
    %8 = arith.truncf %7 : vector<4x288xf32> to vector<4x288xbf16>
    %c0_8 = arith.constant 0 : index
    %c0_9 = arith.constant 0 : index
    %c0_10 = arith.constant 0 : index
    %9 = vector.load %arg2[%c0_8, %c0_9, %c0_10] : memref<9x8x4xbf16, #tpu.memory_space<vmem>>, vector<1x8x4xbf16>
    %10 = vector.shape_cast %9 : vector<1x8x4xbf16> to vector<8x4xbf16>
    %cst = arith.constant dense<0.000000e+00> : vector<8x288xf32>
    %11 = tpu.matmul %10, %8, %cst {dimension_numbers = #tpu.dot_dimension_numbers<[1], [0], [0], [1], [0, 0, 1, 1], [], []>} : vector<8x4xbf16>, vector<4x288xbf16>, vector<8x288xf32> -> vector<8x288xf32>
    %c0_11 = arith.constant 0 : index
    %c0_12 = arith.constant 0 : index
    %c1 = arith.constant 1 : index
    %12 = vector.load %arg1[%c0_11, %c0_12, %c1] : memref<1x4x342xbf16, #tpu.memory_space<vmem>>, vector<1x4x288xbf16>
    %13 = vector.shape_cast %12 : vector<1x4x288xbf16> to vector<4x288xbf16>
    %14 = arith.extf %13 : vector<4x288xbf16> to vector<4x288xf32>
    %c0_13 = arith.constant 0 : index
    %c1_14 = arith.constant 1 : index
    %c0_15 = arith.constant 0 : index
    %c0_16 = arith.constant 0 : index
    %15 = vector.load %arg4[%c0_13, %c1_14, %c0_15, %c0_16] : memref<1x9x4x1xf32, #tpu.memory_space<vmem>>, vector<1x1x4x1xf32>
    %16 = vector.shape_cast %15 : vector<1x1x4x1xf32> to vector<4x1xf32>
    %17 = vector.broadcast %16 : vector<4x1xf32> to vector<4x288xf32>
    %18 = arith.mulf %14, %17 : vector<4x288xf32>
    %19 = arith.truncf %18 : vector<4x288xf32> to vector<4x288xbf16>
    %c1_17 = arith.constant 1 : index
    %c0_18 = arith.constant 0 : index
    %c0_19 = arith.constant 0 : index
    %20 = vector.load %arg2[%c1_17, %c0_18, %c0_19] : memref<9x8x4xbf16, #tpu.memory_space<vmem>>, vector<1x8x4xbf16>
    %21 = vector.shape_cast %20 : vector<1x8x4xbf16> to vector<8x4xbf16>
    %cst_20 = arith.constant dense<0.000000e+00> : vector<8x288xf32>
    %22 = tpu.matmul %21, %19, %cst_20 {dimension_numbers = #tpu.dot_dimension_numbers<[1], [0], [0], [1], [0, 0, 1, 1], [], []>} : vector<8x4xbf16>, vector<4x288xbf16>, vector<8x288xf32> -> vector<8x288xf32>
    %23 = arith.addf %11, %22 : vector<8x288xf32>
    %c0_21 = arith.constant 0 : index
    %c0_22 = arith.constant 0 : index
    %c2 = arith.constant 2 : index
    %24 = vector.load %arg1[%c0_21, %c0_22, %c2] : memref<1x4x342xbf16, #tpu.memory_space<vmem>>, vector<1x4x288xbf16>
    %25 = vector.shape_cast %24 : vector<1x4x288xbf16> to vector<4x288xbf16>
    %26 = arith.extf %25 : vector<4x288xbf16> to vector<4x288xf32>
    %c0_23 = arith.constant 0 : index
    %c2_24 = arith.constant 2 : index
    %c0_25 = arith.constant 0 : index
    %c0_26 = arith.constant 0 : index
    %27 = vector.load %arg4[%c0_23, %c2_24, %c0_25, %c0_26] : memref<1x9x4x1xf32, #tpu.memory_space<vmem>>, vector<1x1x4x1xf32>
    %28 = vector.shape_cast %27 : vector<1x1x4x1xf32> to vector<4x1xf32>
    %29 = vector.broadcast %28 : vector<4x1xf32> to vector<4x288xf32>
    %30 = arith.mulf %26, %29 : vector<4x288xf32>
    %31 = arith.truncf %30 : vector<4x288xf32> to vector<4x288xbf16>
    %c2_27 = arith.constant 2 : index
    %c0_28 = arith.constant 0 : index
    %c0_29 = arith.constant 0 : index
    %32 = vector.load %arg2[%c2_27, %c0_28, %c0_29] : memref<9x8x4xbf16, #tpu.memory_space<vmem>>, vector<1x8x4xbf16>
    %33 = vector.shape_cast %32 : vector<1x8x4xbf16> to vector<8x4xbf16>
    %cst_30 = arith.constant dense<0.000000e+00> : vector<8x288xf32>
    %34 = tpu.matmul %33, %31, %cst_30 {dimension_numbers = #tpu.dot_dimension_numbers<[1], [0], [0], [1], [0, 0, 1, 1], [], []>} : vector<8x4xbf16>, vector<4x288xbf16>, vector<8x288xf32> -> vector<8x288xf32>
    %35 = arith.addf %23, %34 : vector<8x288xf32>
    %c0_31 = arith.constant 0 : index
    %c0_32 = arith.constant 0 : index
    %c18 = arith.constant 18 : index
    %36 = vector.load %arg1[%c0_31, %c0_32, %c18] : memref<1x4x342xbf16, #tpu.memory_space<vmem>>, vector<1x4x288xbf16>
    %37 = vector.shape_cast %36 : vector<1x4x288xbf16> to vector<4x288xbf16>
    %38 = arith.extf %37 : vector<4x288xbf16> to vector<4x288xf32>
    %c0_33 = arith.constant 0 : index
    %c3 = arith.constant 3 : index
    %c0_34 = arith.constant 0 : index
    %c0_35 = arith.constant 0 : index
    %39 = vector.load %arg4[%c0_33, %c3, %c0_34, %c0_35] : memref<1x9x4x1xf32, #tpu.memory_space<vmem>>, vector<1x1x4x1xf32>
    %40 = vector.shape_cast %39 : vector<1x1x4x1xf32> to vector<4x1xf32>
    %41 = vector.broadcast %40 : vector<4x1xf32> to vector<4x288xf32>
    %42 = arith.mulf %38, %41 : vector<4x288xf32>
    %43 = arith.truncf %42 : vector<4x288xf32> to vector<4x288xbf16>
    %c3_36 = arith.constant 3 : index
    %c0_37 = arith.constant 0 : index
    %c0_38 = arith.constant 0 : index
    %44 = vector.load %arg2[%c3_36, %c0_37, %c0_38] : memref<9x8x4xbf16, #tpu.memory_space<vmem>>, vector<1x8x4xbf16>
    %45 = vector.shape_cast %44 : vector<1x8x4xbf16> to vector<8x4xbf16>
    %cst_39 = arith.constant dense<0.000000e+00> : vector<8x288xf32>
    %46 = tpu.matmul %45, %43, %cst_39 {dimension_numbers = #tpu.dot_dimension_numbers<[1], [0], [0], [1], [0, 0, 1, 1], [], []>} : vector<8x4xbf16>, vector<4x288xbf16>, vector<8x288xf32> -> vector<8x288xf32>
    %47 = arith.addf %35, %46 : vector<8x288xf32>
    %c0_40 = arith.constant 0 : index
    %c0_41 = arith.constant 0 : index
    %c19 = arith.constant 19 : index
    %48 = vector.load %arg1[%c0_40, %c0_41, %c19] : memref<1x4x342xbf16, #tpu.memory_space<vmem>>, vector<1x4x288xbf16>
    %49 = vector.shape_cast %48 : vector<1x4x288xbf16> to vector<4x288xbf16>
    %50 = arith.extf %49 : vector<4x288xbf16> to vector<4x288xf32>
    %c0_42 = arith.constant 0 : index
    %c4 = arith.constant 4 : index
    %c0_43 = arith.constant 0 : index
    %c0_44 = arith.constant 0 : index
    %51 = vector.load %arg4[%c0_42, %c4, %c0_43, %c0_44] : memref<1x9x4x1xf32, #tpu.memory_space<vmem>>, vector<1x1x4x1xf32>
    %52 = vector.shape_cast %51 : vector<1x1x4x1xf32> to vector<4x1xf32>
    %53 = vector.broadcast %52 : vector<4x1xf32> to vector<4x288xf32>
    %54 = arith.mulf %50, %53 : vector<4x288xf32>
    %55 = arith.truncf %54 : vector<4x288xf32> to vector<4x288xbf16>
    %c4_45 = arith.constant 4 : index
    %c0_46 = arith.constant 0 : index
    %c0_47 = arith.constant 0 : index
    %56 = vector.load %arg2[%c4_45, %c0_46, %c0_47] : memref<9x8x4xbf16, #tpu.memory_space<vmem>>, vector<1x8x4xbf16>
    %57 = vector.shape_cast %56 : vector<1x8x4xbf16> to vector<8x4xbf16>
    %cst_48 = arith.constant dense<0.000000e+00> : vector<8x288xf32>
    %58 = tpu.matmul %57, %55, %cst_48 {dimension_numbers = #tpu.dot_dimension_numbers<[1], [0], [0], [1], [0, 0, 1, 1], [], []>} : vector<8x4xbf16>, vector<4x288xbf16>, vector<8x288xf32> -> vector<8x288xf32>
    %59 = arith.addf %47, %58 : vector<8x288xf32>
    %c0_49 = arith.constant 0 : index
    %c0_50 = arith.constant 0 : index
    %c20 = arith.constant 20 : index
    %60 = vector.load %arg1[%c0_49, %c0_50, %c20] : memref<1x4x342xbf16, #tpu.memory_space<vmem>>, vector<1x4x288xbf16>
    %61 = vector.shape_cast %60 : vector<1x4x288xbf16> to vector<4x288xbf16>
    %62 = arith.extf %61 : vector<4x288xbf16> to vector<4x288xf32>
    %c0_51 = arith.constant 0 : index
    %c5 = arith.constant 5 : index
    %c0_52 = arith.constant 0 : index
    %c0_53 = arith.constant 0 : index
    %63 = vector.load %arg4[%c0_51, %c5, %c0_52, %c0_53] : memref<1x9x4x1xf32, #tpu.memory_space<vmem>>, vector<1x1x4x1xf32>
    %64 = vector.shape_cast %63 : vector<1x1x4x1xf32> to vector<4x1xf32>
    %65 = vector.broadcast %64 : vector<4x1xf32> to vector<4x288xf32>
    %66 = arith.mulf %62, %65 : vector<4x288xf32>
    %67 = arith.truncf %66 : vector<4x288xf32> to vector<4x288xbf16>
    %c5_54 = arith.constant 5 : index
    %c0_55 = arith.constant 0 : index
    %c0_56 = arith.constant 0 : index
    %68 = vector.load %arg2[%c5_54, %c0_55, %c0_56] : memref<9x8x4xbf16, #tpu.memory_space<vmem>>, vector<1x8x4xbf16>
    %69 = vector.shape_cast %68 : vector<1x8x4xbf16> to vector<8x4xbf16>
    %cst_57 = arith.constant dense<0.000000e+00> : vector<8x288xf32>
    %70 = tpu.matmul %69, %67, %cst_57 {dimension_numbers = #tpu.dot_dimension_numbers<[1], [0], [0], [1], [0, 0, 1, 1], [], []>} : vector<8x4xbf16>, vector<4x288xbf16>, vector<8x288xf32> -> vector<8x288xf32>
    %71 = arith.addf %59, %70 : vector<8x288xf32>
    %c0_58 = arith.constant 0 : index
    %c0_59 = arith.constant 0 : index
    %c36 = arith.constant 36 : index
    %72 = vector.load %arg1[%c0_58, %c0_59, %c36] : memref<1x4x342xbf16, #tpu.memory_space<vmem>>, vector<1x4x288xbf16>
    %73 = vector.shape_cast %72 : vector<1x4x288xbf16> to vector<4x288xbf16>
    %74 = arith.extf %73 : vector<4x288xbf16> to vector<4x288xf32>
    %c0_60 = arith.constant 0 : index
    %c6 = arith.constant 6 : index
    %c0_61 = arith.constant 0 : index
    %c0_62 = arith.constant 0 : index
    %75 = vector.load %arg4[%c0_60, %c6, %c0_61, %c0_62] : memref<1x9x4x1xf32, #tpu.memory_space<vmem>>, vector<1x1x4x1xf32>
    %76 = vector.shape_cast %75 : vector<1x1x4x1xf32> to vector<4x1xf32>
    %77 = vector.broadcast %76 : vector<4x1xf32> to vector<4x288xf32>
    %78 = arith.mulf %74, %77 : vector<4x288xf32>
    %79 = arith.truncf %78 : vector<4x288xf32> to vector<4x288xbf16>
    %c6_63 = arith.constant 6 : index
    %c0_64 = arith.constant 0 : index
    %c0_65 = arith.constant 0 : index
    %80 = vector.load %arg2[%c6_63, %c0_64, %c0_65] : memref<9x8x4xbf16, #tpu.memory_space<vmem>>, vector<1x8x4xbf16>
    %81 = vector.shape_cast %80 : vector<1x8x4xbf16> to vector<8x4xbf16>
    %cst_66 = arith.constant dense<0.000000e+00> : vector<8x288xf32>
    %82 = tpu.matmul %81, %79, %cst_66 {dimension_numbers = #tpu.dot_dimension_numbers<[1], [0], [0], [1], [0, 0, 1, 1], [], []>} : vector<8x4xbf16>, vector<4x288xbf16>, vector<8x288xf32> -> vector<8x288xf32>
    %83 = arith.addf %71, %82 : vector<8x288xf32>
    %c0_67 = arith.constant 0 : index
    %c0_68 = arith.constant 0 : index
    %c37 = arith.constant 37 : index
    %84 = vector.load %arg1[%c0_67, %c0_68, %c37] : memref<1x4x342xbf16, #tpu.memory_space<vmem>>, vector<1x4x288xbf16>
    %85 = vector.shape_cast %84 : vector<1x4x288xbf16> to vector<4x288xbf16>
    %86 = arith.extf %85 : vector<4x288xbf16> to vector<4x288xf32>
    %c0_69 = arith.constant 0 : index
    %c7 = arith.constant 7 : index
    %c0_70 = arith.constant 0 : index
    %c0_71 = arith.constant 0 : index
    %87 = vector.load %arg4[%c0_69, %c7, %c0_70, %c0_71] : memref<1x9x4x1xf32, #tpu.memory_space<vmem>>, vector<1x1x4x1xf32>
    %88 = vector.shape_cast %87 : vector<1x1x4x1xf32> to vector<4x1xf32>
    %89 = vector.broadcast %88 : vector<4x1xf32> to vector<4x288xf32>
    %90 = arith.mulf %86, %89 : vector<4x288xf32>
    %91 = arith.truncf %90 : vector<4x288xf32> to vector<4x288xbf16>
    %c7_72 = arith.constant 7 : index
    %c0_73 = arith.constant 0 : index
    %c0_74 = arith.constant 0 : index
    %92 = vector.load %arg2[%c7_72, %c0_73, %c0_74] : memref<9x8x4xbf16, #tpu.memory_space<vmem>>, vector<1x8x4xbf16>
    %93 = vector.shape_cast %92 : vector<1x8x4xbf16> to vector<8x4xbf16>
    %cst_75 = arith.constant dense<0.000000e+00> : vector<8x288xf32>
    %94 = tpu.matmul %93, %91, %cst_75 {dimension_numbers = #tpu.dot_dimension_numbers<[1], [0], [0], [1], [0, 0, 1, 1], [], []>} : vector<8x4xbf16>, vector<4x288xbf16>, vector<8x288xf32> -> vector<8x288xf32>
    %95 = arith.addf %83, %94 : vector<8x288xf32>
    %c0_76 = arith.constant 0 : index
    %c0_77 = arith.constant 0 : index
    %c38 = arith.constant 38 : index
    %96 = vector.load %arg1[%c0_76, %c0_77, %c38] : memref<1x4x342xbf16, #tpu.memory_space<vmem>>, vector<1x4x288xbf16>
    %97 = vector.shape_cast %96 : vector<1x4x288xbf16> to vector<4x288xbf16>
    %98 = arith.extf %97 : vector<4x288xbf16> to vector<4x288xf32>
    %c0_78 = arith.constant 0 : index
    %c8 = arith.constant 8 : index
    %c0_79 = arith.constant 0 : index
    %c0_80 = arith.constant 0 : index
    %99 = vector.load %arg4[%c0_78, %c8, %c0_79, %c0_80] : memref<1x9x4x1xf32, #tpu.memory_space<vmem>>, vector<1x1x4x1xf32>
    %100 = vector.shape_cast %99 : vector<1x1x4x1xf32> to vector<4x1xf32>
    %101 = vector.broadcast %100 : vector<4x1xf32> to vector<4x288xf32>
    %102 = arith.mulf %98, %101 : vector<4x288xf32>
    %103 = arith.truncf %102 : vector<4x288xf32> to vector<4x288xbf16>
    %c8_81 = arith.constant 8 : index
    %c0_82 = arith.constant 0 : index
    %c0_83 = arith.constant 0 : index
    %104 = vector.load %arg2[%c8_81, %c0_82, %c0_83] : memref<9x8x4xbf16, #tpu.memory_space<vmem>>, vector<1x8x4xbf16>
    %105 = vector.shape_cast %104 : vector<1x8x4xbf16> to vector<8x4xbf16>
    %cst_84 = arith.constant dense<0.000000e+00> : vector<8x288xf32>
    %106 = tpu.matmul %105, %103, %cst_84 {dimension_numbers = #tpu.dot_dimension_numbers<[1], [0], [0], [1], [0, 0, 1, 1], [], []>} : vector<8x4xbf16>, vector<4x288xbf16>, vector<8x288xf32> -> vector<8x288xf32>
    %107 = arith.addf %95, %106 : vector<8x288xf32>
    %c0_85 = arith.constant 0 : index
    %c0_86 = arith.constant 0 : index
    %c0_87 = arith.constant 0 : index
    %108 = vector.load %arg5[%c0_85, %c0_86, %c0_87] : memref<1x8x1xf32, #tpu.memory_space<vmem>>, vector<1x8x1xf32>
    %109 = vector.shape_cast %108 : vector<1x8x1xf32> to vector<8x1xf32>
    %110 = vector.broadcast %109 : vector<8x1xf32> to vector<8x288xf32>
    %111 = arith.mulf %107, %110 : vector<8x288xf32>
    %112 = vector.broadcast %0 : vector<1x288xf32> to vector<8x288xf32>
    %113 = arith.mulf %111, %112 : vector<8x288xf32>
    %cst_88 = arith.constant dense<0.000000e+00> : vector<8xf32>
    %114 = vector.multi_reduction <add>, %113, %cst_88 [1] : vector<8x288xf32> to vector<8xf32>
    %115 = vector.shape_cast %114 : vector<8xf32> to vector<8x1xf32>
    %cst_89 = arith.constant 3.906250e-03 : f32
    %116 = vector.broadcast %cst_89 : f32 to vector<8x1xf32>
    %117 = arith.mulf %115, %116 : vector<8x1xf32>
    %118 = vector.broadcast %117 : vector<8x1xf32> to vector<8x288xf32>
    %119 = arith.subf %111, %118 : vector<8x288xf32>
    %120 = vector.broadcast %0 : vector<1x288xf32> to vector<8x288xf32>
    %121 = arith.mulf %119, %120 : vector<8x288xf32>
    %122 = arith.mulf %121, %121 : vector<8x288xf32>
    %cst_90 = arith.constant dense<0.000000e+00> : vector<8xf32>
    %123 = vector.multi_reduction <add>, %122, %cst_90 [1] : vector<8x288xf32> to vector<8xf32>
    %124 = vector.shape_cast %123 : vector<8xf32> to vector<8x1xf32>
    %cst_91 = arith.constant 3.906250e-03 : f32
    %125 = vector.broadcast %cst_91 : f32 to vector<8x1xf32>
    %126 = arith.mulf %124, %125 : vector<8x1xf32>
    %cst_92 = arith.constant 9.99999974E-6 : f32
    %127 = vector.broadcast %cst_92 : f32 to vector<8x1xf32>
    %128 = arith.addf %126, %127 : vector<8x1xf32>
    %129 = math.rsqrt %128 : vector<8x1xf32>
    %130 = vector.broadcast %129 : vector<8x1xf32> to vector<8x288xf32>
    %131 = arith.mulf %121, %130 : vector<8x288xf32>
    %cst_93 = arith.constant 0.000000e+00 : f32
    %132 = vector.broadcast %cst_93 : f32 to vector<8x288xf32>
    %133 = arith.cmpf ogt, %131, %132 : vector<8x288xf32>
    %cst_94 = arith.constant 0.00999999977 : f32
    %134 = vector.broadcast %cst_94 : f32 to vector<8x288xf32>
    %135 = arith.mulf %134, %131 : vector<8x288xf32>
    %136 = arith.select %133, %131, %135 : vector<8x288xi1>, vector<8x288xf32>
    %cst_95 = arith.constant 0.000000e+00 : bf16
    %137 = vector.broadcast %cst_95 : bf16 to vector<8x19xbf16>
    %c0_96 = arith.constant 0 : index
    %c0_97 = arith.constant 0 : index
    %c0_98 = arith.constant 0 : index
    %138 = vector.load %arg6[%c0_96, %c0_97, %c0_98] : memref<1x8x342xbf16, #tpu.memory_space<vmem>>, vector<1x8x19xbf16>
    %139 = vector.shape_cast %138 : vector<1x8x19xbf16> to vector<8x19xbf16>
    %140 = vector.shape_cast %137 : vector<8x19xbf16> to vector<1x8x19xbf16>
    tpu.vector_store %arg6[%c0_96, %c0_97, %c0_98], %140 {strides = array<i32>} : memref<1x8x342xbf16, #tpu.memory_space<vmem>>, vector<1x8x19xbf16>,
    %141 = arith.truncf %136 : vector<8x288xf32> to vector<8x288xbf16>
    %c0_99 = arith.constant 0 : index
    %c0_100 = arith.constant 0 : index
    %c19_101 = arith.constant 19 : index
    %142 = vector.load %arg6[%c0_99, %c0_100, %c19_101] : memref<1x8x342xbf16, #tpu.memory_space<vmem>>, vector<1x8x288xbf16>
    %143 = vector.shape_cast %142 : vector<1x8x288xbf16> to vector<8x288xbf16>
    %144 = vector.shape_cast %141 : vector<8x288xbf16> to vector<1x8x288xbf16>
    tpu.vector_store %arg6[%c0_99, %c0_100, %c19_101], %144 {strides = array<i32>} : memref<1x8x342xbf16, #tpu.memory_space<vmem>>, vector<1x8x288xbf16>,
    %cst_102 = arith.constant 0.000000e+00 : bf16
    %145 = vector.broadcast %cst_102 : bf16 to vector<8x35xbf16>
    %c0_103 = arith.constant 0 : index
    %c0_104 = arith.constant 0 : index
    %c307 = arith.constant 307 : index
    %146 = vector.load %arg6[%c0_103, %c0_104, %c307] : memref<1x8x342xbf16, #tpu.memory_space<vmem>>, vector<1x8x35xbf16>
    %147 = vector.shape_cast %146 : vector<1x8x35xbf16> to vector<8x35xbf16>
    %148 = vector.shape_cast %145 : vector<8x35xbf16> to vector<1x8x35xbf16>
    tpu.vector_store %arg6[%c0_103, %c0_104, %c307], %148 {strides = array<i32>} : memref<1x8x342xbf16, #tpu.memory_space<vmem>>, vector<1x8x35xbf16>,
    return
  }
  func.func @transform_0(%arg0: i32) -> (i32, i32, i32) {
    %c0_i32 = arith.constant 0 : i32
    %c0_i32_0 = arith.constant 0 : i32
    %c0_i32_1 = arith.constant 0 : i32
    return %arg0, %c0_i32, %c0_i32_0 : i32, i32, i32
  }
  func.func @transform_1(%arg0: i32) -> (i32, i32, i32) {
    %c0_i32 = arith.constant 0 : i32
    %c0_i32_0 = arith.constant 0 : i32
    %c0_i32_1 = arith.constant 0 : i32
    %c0_i32_2 = arith.constant 0 : i32
    return %c0_i32, %c0_i32_0, %c0_i32_1 : i32, i32, i32
  }
  func.func @transform_2(%arg0: i32) -> (i32, i32) {
    %c0_i32 = arith.constant 0 : i32
    %c0_i32_0 = arith.constant 0 : i32
    %c0_i32_1 = arith.constant 0 : i32
    return %c0_i32, %c0_i32_0 : i32, i32
  }
  func.func @transform_3(%arg0: i32) -> (i32, i32, i32, i32) {
    %c0_i32 = arith.constant 0 : i32
    %c0_i32_0 = arith.constant 0 : i32
    %c0_i32_1 = arith.constant 0 : i32
    %c0_i32_2 = arith.constant 0 : i32
    return %arg0, %c0_i32, %c0_i32_0, %c0_i32_1 : i32, i32, i32, i32
  }
  func.func @transform_4(%arg0: i32) -> (i32, i32, i32) {
    %c0_i32 = arith.constant 0 : i32
    %c0_i32_0 = arith.constant 0 : i32
    %c0_i32_1 = arith.constant 0 : i32
    return %arg0, %c0_i32, %c0_i32_0 : i32, i32, i32
  }
  func.func @transform_5(%arg0: i32) -> (i32, i32, i32) {
    %c0_i32 = arith.constant 0 : i32
    %c0_i32_0 = arith.constant 0 : i32
    %c0_i32_1 = arith.constant 0 : i32
    return %arg0, %c0_i32, %c0_i32_0 : i32, i32, i32
  }
}

module attributes {stable_mosaic.version = 11 : i64} {
  func.func @_fused_dyconv_in_lrelu_kernel(%arg0: i32, %arg1: memref<1x8x342xbf16, #tpu.memory_space<vmem>>, %arg2: memref<9x8x8xbf16, #tpu.memory_space<vmem>>, %arg3: memref<1x288xf32, #tpu.memory_space<vmem>>, %arg4: memref<1x8x342xf32, #tpu.memory_space<vmem>>) attributes {dimension_semantics = [#tpu.dimension_semantics<parallel>], iteration_bounds = array<i64: 2>, scalar_prefetch = 0 : i64, scratch_operands = 0 : i64, tpu.core_type = #tpu.core_type<tc>, window_params = [{transform_indices = @transform_0, window_bounds = array<i64: 1, 8, 342>}, {pipeline_mode = #tpu.pipeline_mode<synchronous>, transform_indices = @transform_1, window_bounds = array<i64: 9, 8, 8>}, {pipeline_mode = #tpu.pipeline_mode<synchronous>, transform_indices = @transform_2, window_bounds = array<i64: 1, 288>}, {transform_indices = @transform_3, window_bounds = array<i64: 1, 8, 342>}]} {
    %c0 = arith.constant 0 : index
    %c0_0 = arith.constant 0 : index
    %0 = vector.load %arg3[%c0, %c0_0] : memref<1x288xf32, #tpu.memory_space<vmem>>, vector<1x288xf32>
    %c0_1 = arith.constant 0 : index
    %c0_2 = arith.constant 0 : index
    %c0_3 = arith.constant 0 : index
    %1 = vector.load %arg1[%c0_1, %c0_2, %c0_3] : memref<1x8x342xbf16, #tpu.memory_space<vmem>>, vector<1x8x288xbf16>
    %2 = vector.shape_cast %1 : vector<1x8x288xbf16> to vector<8x288xbf16>
    %c0_4 = arith.constant 0 : index
    %c0_5 = arith.constant 0 : index
    %c0_6 = arith.constant 0 : index
    %3 = vector.load %arg2[%c0_4, %c0_5, %c0_6] : memref<9x8x8xbf16, #tpu.memory_space<vmem>>, vector<1x8x8xbf16>
    %4 = vector.shape_cast %3 : vector<1x8x8xbf16> to vector<8x8xbf16>
    %cst = arith.constant dense<0.000000e+00> : vector<8x288xf32>
    %5 = tpu.matmul %4, %2, %cst {dimension_numbers = #tpu.dot_dimension_numbers<[1], [0], [0], [1], [0, 0, 1, 1], [], []>} : vector<8x8xbf16>, vector<8x288xbf16>, vector<8x288xf32> -> vector<8x288xf32>
    %c0_7 = arith.constant 0 : index
    %c0_8 = arith.constant 0 : index
    %c1 = arith.constant 1 : index
    %6 = vector.load %arg1[%c0_7, %c0_8, %c1] : memref<1x8x342xbf16, #tpu.memory_space<vmem>>, vector<1x8x288xbf16>
    %7 = vector.shape_cast %6 : vector<1x8x288xbf16> to vector<8x288xbf16>
    %c1_9 = arith.constant 1 : index
    %c0_10 = arith.constant 0 : index
    %c0_11 = arith.constant 0 : index
    %8 = vector.load %arg2[%c1_9, %c0_10, %c0_11] : memref<9x8x8xbf16, #tpu.memory_space<vmem>>, vector<1x8x8xbf16>
    %9 = vector.shape_cast %8 : vector<1x8x8xbf16> to vector<8x8xbf16>
    %cst_12 = arith.constant dense<0.000000e+00> : vector<8x288xf32>
    %10 = tpu.matmul %9, %7, %cst_12 {dimension_numbers = #tpu.dot_dimension_numbers<[1], [0], [0], [1], [0, 0, 1, 1], [], []>} : vector<8x8xbf16>, vector<8x288xbf16>, vector<8x288xf32> -> vector<8x288xf32>
    %11 = arith.addf %5, %10 : vector<8x288xf32>
    %c0_13 = arith.constant 0 : index
    %c0_14 = arith.constant 0 : index
    %c2 = arith.constant 2 : index
    %12 = vector.load %arg1[%c0_13, %c0_14, %c2] : memref<1x8x342xbf16, #tpu.memory_space<vmem>>, vector<1x8x288xbf16>
    %13 = vector.shape_cast %12 : vector<1x8x288xbf16> to vector<8x288xbf16>
    %c2_15 = arith.constant 2 : index
    %c0_16 = arith.constant 0 : index
    %c0_17 = arith.constant 0 : index
    %14 = vector.load %arg2[%c2_15, %c0_16, %c0_17] : memref<9x8x8xbf16, #tpu.memory_space<vmem>>, vector<1x8x8xbf16>
    %15 = vector.shape_cast %14 : vector<1x8x8xbf16> to vector<8x8xbf16>
    %cst_18 = arith.constant dense<0.000000e+00> : vector<8x288xf32>
    %16 = tpu.matmul %15, %13, %cst_18 {dimension_numbers = #tpu.dot_dimension_numbers<[1], [0], [0], [1], [0, 0, 1, 1], [], []>} : vector<8x8xbf16>, vector<8x288xbf16>, vector<8x288xf32> -> vector<8x288xf32>
    %17 = arith.addf %11, %16 : vector<8x288xf32>
    %c0_19 = arith.constant 0 : index
    %c0_20 = arith.constant 0 : index
    %c18 = arith.constant 18 : index
    %18 = vector.load %arg1[%c0_19, %c0_20, %c18] : memref<1x8x342xbf16, #tpu.memory_space<vmem>>, vector<1x8x288xbf16>
    %19 = vector.shape_cast %18 : vector<1x8x288xbf16> to vector<8x288xbf16>
    %c3 = arith.constant 3 : index
    %c0_21 = arith.constant 0 : index
    %c0_22 = arith.constant 0 : index
    %20 = vector.load %arg2[%c3, %c0_21, %c0_22] : memref<9x8x8xbf16, #tpu.memory_space<vmem>>, vector<1x8x8xbf16>
    %21 = vector.shape_cast %20 : vector<1x8x8xbf16> to vector<8x8xbf16>
    %cst_23 = arith.constant dense<0.000000e+00> : vector<8x288xf32>
    %22 = tpu.matmul %21, %19, %cst_23 {dimension_numbers = #tpu.dot_dimension_numbers<[1], [0], [0], [1], [0, 0, 1, 1], [], []>} : vector<8x8xbf16>, vector<8x288xbf16>, vector<8x288xf32> -> vector<8x288xf32>
    %23 = arith.addf %17, %22 : vector<8x288xf32>
    %c0_24 = arith.constant 0 : index
    %c0_25 = arith.constant 0 : index
    %c19 = arith.constant 19 : index
    %24 = vector.load %arg1[%c0_24, %c0_25, %c19] : memref<1x8x342xbf16, #tpu.memory_space<vmem>>, vector<1x8x288xbf16>
    %25 = vector.shape_cast %24 : vector<1x8x288xbf16> to vector<8x288xbf16>
    %c4 = arith.constant 4 : index
    %c0_26 = arith.constant 0 : index
    %c0_27 = arith.constant 0 : index
    %26 = vector.load %arg2[%c4, %c0_26, %c0_27] : memref<9x8x8xbf16, #tpu.memory_space<vmem>>, vector<1x8x8xbf16>
    %27 = vector.shape_cast %26 : vector<1x8x8xbf16> to vector<8x8xbf16>
    %cst_28 = arith.constant dense<0.000000e+00> : vector<8x288xf32>
    %28 = tpu.matmul %27, %25, %cst_28 {dimension_numbers = #tpu.dot_dimension_numbers<[1], [0], [0], [1], [0, 0, 1, 1], [], []>} : vector<8x8xbf16>, vector<8x288xbf16>, vector<8x288xf32> -> vector<8x288xf32>
    %29 = arith.addf %23, %28 : vector<8x288xf32>
    %c0_29 = arith.constant 0 : index
    %c0_30 = arith.constant 0 : index
    %c20 = arith.constant 20 : index
    %30 = vector.load %arg1[%c0_29, %c0_30, %c20] : memref<1x8x342xbf16, #tpu.memory_space<vmem>>, vector<1x8x288xbf16>
    %31 = vector.shape_cast %30 : vector<1x8x288xbf16> to vector<8x288xbf16>
    %c5 = arith.constant 5 : index
    %c0_31 = arith.constant 0 : index
    %c0_32 = arith.constant 0 : index
    %32 = vector.load %arg2[%c5, %c0_31, %c0_32] : memref<9x8x8xbf16, #tpu.memory_space<vmem>>, vector<1x8x8xbf16>
    %33 = vector.shape_cast %32 : vector<1x8x8xbf16> to vector<8x8xbf16>
    %cst_33 = arith.constant dense<0.000000e+00> : vector<8x288xf32>
    %34 = tpu.matmul %33, %31, %cst_33 {dimension_numbers = #tpu.dot_dimension_numbers<[1], [0], [0], [1], [0, 0, 1, 1], [], []>} : vector<8x8xbf16>, vector<8x288xbf16>, vector<8x288xf32> -> vector<8x288xf32>
    %35 = arith.addf %29, %34 : vector<8x288xf32>
    %c0_34 = arith.constant 0 : index
    %c0_35 = arith.constant 0 : index
    %c36 = arith.constant 36 : index
    %36 = vector.load %arg1[%c0_34, %c0_35, %c36] : memref<1x8x342xbf16, #tpu.memory_space<vmem>>, vector<1x8x288xbf16>
    %37 = vector.shape_cast %36 : vector<1x8x288xbf16> to vector<8x288xbf16>
    %c6 = arith.constant 6 : index
    %c0_36 = arith.constant 0 : index
    %c0_37 = arith.constant 0 : index
    %38 = vector.load %arg2[%c6, %c0_36, %c0_37] : memref<9x8x8xbf16, #tpu.memory_space<vmem>>, vector<1x8x8xbf16>
    %39 = vector.shape_cast %38 : vector<1x8x8xbf16> to vector<8x8xbf16>
    %cst_38 = arith.constant dense<0.000000e+00> : vector<8x288xf32>
    %40 = tpu.matmul %39, %37, %cst_38 {dimension_numbers = #tpu.dot_dimension_numbers<[1], [0], [0], [1], [0, 0, 1, 1], [], []>} : vector<8x8xbf16>, vector<8x288xbf16>, vector<8x288xf32> -> vector<8x288xf32>
    %41 = arith.addf %35, %40 : vector<8x288xf32>
    %c0_39 = arith.constant 0 : index
    %c0_40 = arith.constant 0 : index
    %c37 = arith.constant 37 : index
    %42 = vector.load %arg1[%c0_39, %c0_40, %c37] : memref<1x8x342xbf16, #tpu.memory_space<vmem>>, vector<1x8x288xbf16>
    %43 = vector.shape_cast %42 : vector<1x8x288xbf16> to vector<8x288xbf16>
    %c7 = arith.constant 7 : index
    %c0_41 = arith.constant 0 : index
    %c0_42 = arith.constant 0 : index
    %44 = vector.load %arg2[%c7, %c0_41, %c0_42] : memref<9x8x8xbf16, #tpu.memory_space<vmem>>, vector<1x8x8xbf16>
    %45 = vector.shape_cast %44 : vector<1x8x8xbf16> to vector<8x8xbf16>
    %cst_43 = arith.constant dense<0.000000e+00> : vector<8x288xf32>
    %46 = tpu.matmul %45, %43, %cst_43 {dimension_numbers = #tpu.dot_dimension_numbers<[1], [0], [0], [1], [0, 0, 1, 1], [], []>} : vector<8x8xbf16>, vector<8x288xbf16>, vector<8x288xf32> -> vector<8x288xf32>
    %47 = arith.addf %41, %46 : vector<8x288xf32>
    %c0_44 = arith.constant 0 : index
    %c0_45 = arith.constant 0 : index
    %c38 = arith.constant 38 : index
    %48 = vector.load %arg1[%c0_44, %c0_45, %c38] : memref<1x8x342xbf16, #tpu.memory_space<vmem>>, vector<1x8x288xbf16>
    %49 = vector.shape_cast %48 : vector<1x8x288xbf16> to vector<8x288xbf16>
    %c8 = arith.constant 8 : index
    %c0_46 = arith.constant 0 : index
    %c0_47 = arith.constant 0 : index
    %50 = vector.load %arg2[%c8, %c0_46, %c0_47] : memref<9x8x8xbf16, #tpu.memory_space<vmem>>, vector<1x8x8xbf16>
    %51 = vector.shape_cast %50 : vector<1x8x8xbf16> to vector<8x8xbf16>
    %cst_48 = arith.constant dense<0.000000e+00> : vector<8x288xf32>
    %52 = tpu.matmul %51, %49, %cst_48 {dimension_numbers = #tpu.dot_dimension_numbers<[1], [0], [0], [1], [0, 0, 1, 1], [], []>} : vector<8x8xbf16>, vector<8x288xbf16>, vector<8x288xf32> -> vector<8x288xf32>
    %53 = arith.addf %47, %52 : vector<8x288xf32>
    %54 = vector.broadcast %0 : vector<1x288xf32> to vector<8x288xf32>
    %55 = arith.mulf %53, %54 : vector<8x288xf32>
    %cst_49 = arith.constant dense<0.000000e+00> : vector<8xf32>
    %56 = vector.multi_reduction <add>, %55, %cst_49 [1] : vector<8x288xf32> to vector<8xf32>
    %57 = vector.shape_cast %56 : vector<8xf32> to vector<8x1xf32>
    %cst_50 = arith.constant 3.906250e-03 : f32
    %58 = vector.broadcast %cst_50 : f32 to vector<8x1xf32>
    %59 = arith.mulf %57, %58 : vector<8x1xf32>
    %60 = vector.broadcast %59 : vector<8x1xf32> to vector<8x288xf32>
    %61 = arith.subf %53, %60 : vector<8x288xf32>
    %62 = vector.broadcast %0 : vector<1x288xf32> to vector<8x288xf32>
    %63 = arith.mulf %61, %62 : vector<8x288xf32>
    %64 = arith.mulf %63, %63 : vector<8x288xf32>
    %cst_51 = arith.constant dense<0.000000e+00> : vector<8xf32>
    %65 = vector.multi_reduction <add>, %64, %cst_51 [1] : vector<8x288xf32> to vector<8xf32>
    %66 = vector.shape_cast %65 : vector<8xf32> to vector<8x1xf32>
    %cst_52 = arith.constant 3.906250e-03 : f32
    %67 = vector.broadcast %cst_52 : f32 to vector<8x1xf32>
    %68 = arith.mulf %66, %67 : vector<8x1xf32>
    %cst_53 = arith.constant 9.99999974E-6 : f32
    %69 = vector.broadcast %cst_53 : f32 to vector<8x1xf32>
    %70 = arith.addf %68, %69 : vector<8x1xf32>
    %71 = math.rsqrt %70 : vector<8x1xf32>
    %72 = vector.broadcast %71 : vector<8x1xf32> to vector<8x288xf32>
    %73 = arith.mulf %63, %72 : vector<8x288xf32>
    %cst_54 = arith.constant 0.000000e+00 : f32
    %74 = vector.broadcast %cst_54 : f32 to vector<8x288xf32>
    %75 = arith.cmpf ogt, %73, %74 : vector<8x288xf32>
    %cst_55 = arith.constant 0.00999999977 : f32
    %76 = vector.broadcast %cst_55 : f32 to vector<8x288xf32>
    %77 = arith.mulf %76, %73 : vector<8x288xf32>
    %78 = arith.select %75, %73, %77 : vector<8x288xi1>, vector<8x288xf32>
    %cst_56 = arith.constant 0.000000e+00 : f32
    %79 = vector.broadcast %cst_56 : f32 to vector<8x19xf32>
    %c0_57 = arith.constant 0 : index
    %c0_58 = arith.constant 0 : index
    %c0_59 = arith.constant 0 : index
    %80 = vector.load %arg4[%c0_57, %c0_58, %c0_59] : memref<1x8x342xf32, #tpu.memory_space<vmem>>, vector<1x8x19xf32>
    %81 = vector.shape_cast %80 : vector<1x8x19xf32> to vector<8x19xf32>
    %82 = vector.shape_cast %79 : vector<8x19xf32> to vector<1x8x19xf32>
    tpu.vector_store %arg4[%c0_57, %c0_58, %c0_59], %82 {strides = array<i32>} : memref<1x8x342xf32, #tpu.memory_space<vmem>>, vector<1x8x19xf32>,
    %c0_60 = arith.constant 0 : index
    %c0_61 = arith.constant 0 : index
    %c19_62 = arith.constant 19 : index
    %83 = vector.load %arg4[%c0_60, %c0_61, %c19_62] : memref<1x8x342xf32, #tpu.memory_space<vmem>>, vector<1x8x288xf32>
    %84 = vector.shape_cast %83 : vector<1x8x288xf32> to vector<8x288xf32>
    %85 = vector.shape_cast %78 : vector<8x288xf32> to vector<1x8x288xf32>
    tpu.vector_store %arg4[%c0_60, %c0_61, %c19_62], %85 {strides = array<i32>} : memref<1x8x342xf32, #tpu.memory_space<vmem>>, vector<1x8x288xf32>,
    %cst_63 = arith.constant 0.000000e+00 : f32
    %86 = vector.broadcast %cst_63 : f32 to vector<8x35xf32>
    %c0_64 = arith.constant 0 : index
    %c0_65 = arith.constant 0 : index
    %c307 = arith.constant 307 : index
    %87 = vector.load %arg4[%c0_64, %c0_65, %c307] : memref<1x8x342xf32, #tpu.memory_space<vmem>>, vector<1x8x35xf32>
    %88 = vector.shape_cast %87 : vector<1x8x35xf32> to vector<8x35xf32>
    %89 = vector.shape_cast %86 : vector<8x35xf32> to vector<1x8x35xf32>
    tpu.vector_store %arg4[%c0_64, %c0_65, %c307], %89 {strides = array<i32>} : memref<1x8x342xf32, #tpu.memory_space<vmem>>, vector<1x8x35xf32>,
    return
  }
  func.func @transform_0(%arg0: i32) -> (i32, i32, i32) {
    %c0_i32 = arith.constant 0 : i32
    %c0_i32_0 = arith.constant 0 : i32
    %c0_i32_1 = arith.constant 0 : i32
    return %arg0, %c0_i32, %c0_i32_0 : i32, i32, i32
  }
  func.func @transform_1(%arg0: i32) -> (i32, i32, i32) {
    %c0_i32 = arith.constant 0 : i32
    %c0_i32_0 = arith.constant 0 : i32
    %c0_i32_1 = arith.constant 0 : i32
    %c0_i32_2 = arith.constant 0 : i32
    return %c0_i32, %c0_i32_0, %c0_i32_1 : i32, i32, i32
  }
  func.func @transform_2(%arg0: i32) -> (i32, i32) {
    %c0_i32 = arith.constant 0 : i32
    %c0_i32_0 = arith.constant 0 : i32
    %c0_i32_1 = arith.constant 0 : i32
    return %c0_i32, %c0_i32_0 : i32, i32
  }
  func.func @transform_3(%arg0: i32) -> (i32, i32, i32) {
    %c0_i32 = arith.constant 0 : i32
    %c0_i32_0 = arith.constant 0 : i32
    %c0_i32_1 = arith.constant 0 : i32
    return %arg0, %c0_i32, %c0_i32_0 : i32, i32, i32
  }
}

</mosaic_0001>

<bundles_post_ra>
// kernel: unetr_basic_block_dyqkv_forward.3
= control target key start
LH: loop header
LB: loop body
LE: loop exit
PB: predicated region body
PF: predicated region fallthrough
CT: control target
= control target key end

     0   :  { %s991_s12 = smov 0   ;;  %s1121_s0 = inlined_call_operand.vmem [shape: bf16[2,8,342], index: 0, kind: input, shape index: {}]   ;;  %s1122_s1 = inlined_call_operand.vmem [shape: bf16[9,8,8], index: 1, kind: input, shape index: {}]   ;;  %s1123_s2 = inlined_call_operand.vmem [shape: f32[1,288], index: 2, kind: input, shape index: {}]   ;;  %s1124_s3 = inlined_call_operand.vmem [shape: f32[2,8,342], index: 3, kind: output, shape index: {}]  }
   0x1 LB: > { %s887_s13 = sadd.s32 4294967295, %s959_s12   ;;  %p891_p0 = scmp.ge.s32.totalorder %s959_s12, 1  ;;  %s959_s12 = sphi %s991_s12, %s13_s12  }
   0x2   : > { %p137_p1 = scmp.lt.s32.totalorder %s959_s12, 3 }
   0x4   : > { %p138_p2 = pnand %p891_p0, %p137_p1 }
   0x5   : > { %p161_p3 = scmp.lt.s32.totalorder (!%p138_p2), %s887_s13, 1  ;;  %s961_s18 = smov (!%p138_p2), 127  }
   0x6   : > { %141 = sbr.rel (%p138_p2) target bundleno = 758 (0x2f6), region = 32  ;;  %s962_s19 = smov (!%p138_p2), 126  }
   0x7   : > { %s963_s20 = smov (!%p138_p2), 110   ;;  %s964_s21 = smov (!%p138_p2), 109  }
   0x8   : > { %s965_s22 = smov (!%p138_p2), 108   ;;  %s966_s23 = smov (!%p138_p2), 92  }
   0x9   : > { %s967_s24 = smov (!%p138_p2), 91   ;;  %s968_s25 = smov (!%p138_p2), 90  }
   0xb   : > { %s1126_s13 = smov (!%p161_p3, %s887_s13), 1  ;;  %vm199_vm0 = vcmask 1043456   ;;  %vm195_vm1 = vcmask 64512   ;;  %v1019_v9 = vld [vmem:[%s1122_s1] sm:$0xf]  ;;  %vm307_vm2 = vcmask 1031168  }
   0xc   : > { %s931_s14 = smul.u32 12, %s1126_s13  ;;  %v1028_v14 = vld [vmem:[%s1122_s1 + $0x8] sm:$0xf]  ;;  %vm192_vm3 = vcmask 1039360   ;;  %v894_v21 = vld [vmem:[%s1122_s1 + $0x4] sm:$0xf] }
   0xd   : > { %vm372_vm4 = vcmask 900096   ;;  %v905_v38 = vld [vmem:[%s1122_s1 + $0xc] sm:$0xf]  ;;  %vm437_vm5 = vcmask 891904   ;;  %vm502_vm6 = vcmask 883712   ;;  %vm567_vm7 = vcmask 752640  }
   0xe   : > { %s165_s17 = scalar_lea.vmem %s1121_s0, %s931_s14  ;;  %v913_v52 = vld [vmem:[%s1122_s1 + $0x14] sm:$0xf]  ;;  %vm632_vm8 = vcmask 744448   ;;  %vm697_vm9 = vcmask 736256   ;;  %vm765_vm10 = vcmask 261120  }
   0xf   : > { %v174_v0 = vld [vmem:[%s165_s17 + $0x8] sm:$0xf]  ;;  %v173_v1 = vld [vmem:[%s165_s17] sm:$0xff] }
  0x10   : > { %v182_v2 = vunpack.c.l.b16 %v174_v0  ;;  %v181_v3 = vunpack.c.h.b16 %v173_v1  ;;  %v180_v6 = vunpack.c.l.b16 %v173_v1 }
  0x12   : > { %v185_v4 = vpack.c.b16 %v182_v2, %v182_v2  ;;  %v1005_v5 = vpack.c.b16 %v181_v3, %v181_v3  ;;  %v183_v7 = vpack.c.b16 %v180_v6, %v180_v6 }
  0x14   : > { %190 = vrot.lane.b32.xlu0 %v185_v4, %s961_s18  ;;  %188 = vrot.lane.b32.xlu1 %v1005_v5, %s961_s18  ;;  %v252_v8 = vsel %vm199_vm0, %v183_v7, 0  ;;  %v258_v19 = vsel %vm199_vm0, %v185_v4, 0  ;;  %v255_v26 = vsel %vm199_vm0, %v1005_v5, 0 }
  0x15   : > { %303 = vrot.lane.b32.xlu2 %v1005_v5, %s962_s19  ;;  %267 = vmatpush.bf16.msra.mxu3 %v252_v8  ;;  %v917_v8 = vld [vmem:[%s1122_s1 + $0x18] sm:$0xf] }
  0x18   : > { %898 = vmatmul.msk.bf16.vlgmr.msra.gmra.mxu3 %vm195_vm1, %v1019_v9 }
  0x1c   : > { %301 = vrot.lane.b32.xlu1 %v183_v7, %s962_s19  ;;  %186 = vrot.lane.b32.xlu0 %v183_v7, %s961_s18 }
  0x1d   : > { %305 = vrot.lane.b32.xlu2 %v185_v4, %s962_s19 }
  0x24   : > { %370 = vrot.lane.b32.xlu1 %v185_v4, %s963_s20  ;;  %368 = vrot.lane.b32.xlu0 %v1005_v5, %s963_s20 }
  0x25   : > { %366 = vrot.lane.b32.xlu2 %v183_v7, %s963_s20 }
  0x2c   : > { %431 = vrot.lane.b32.xlu1 %v183_v7, %s964_s21  ;;  %435 = vrot.lane.b32.xlu0 %v185_v4, %s964_s21 }
  0x2d   : > { %433 = vrot.lane.b32.xlu2 %v1005_v5, %s964_s21  ;;  %s969_s21 = smov 19  }
  0x34   : > { %498 = vrot.lane.b32.xlu1 %v1005_v5, %s965_s22  ;;  %496 = vrot.lane.b32.xlu0 %v183_v7, %s965_s22 }
  0x35   : > { %561 = vrot.lane.b32.xlu2 %v183_v7, %s966_s23 }
  0x3c   : > { %500 = vrot.lane.b32.xlu1 %v185_v4, %s965_s22  ;;  %563 = vrot.lane.b32.xlu0 %v1005_v5, %s966_s23  ;;  %s932_s22 = smul.u32 24, %s1126_s13 }
  0x3d   : > { %565 = vrot.lane.b32.xlu2 %v185_v4, %s966_s23 }
  0x44   : > { %630 = vrot.lane.b32.xlu1 %v185_v4, %s967_s24  ;;  %628 = vrot.lane.b32.xlu0 %v1005_v5, %s967_s24 }
  0x45   : > { %626 = vrot.lane.b32.xlu2 %v183_v7, %s967_s24 }
  0x4c   : > { %695 = vrot.lane.b32.xlu0 %v185_v4, %s968_s25  ;;  %691 = vrot.lane.b32.xlu1 %v183_v7, %s968_s25 }
  0x4d   : > { %693 = vrot.lane.b32.xlu2 %v1005_v5, %s968_s25  ;;  %v909_v5 = vld [vmem:[%s1122_s1 + $0x10] sm:$0xf]  ;;  %s170_s25 = scalar_lea.vmem %s1124_s3, %s932_s22 }
  0x6f   : > { %v304_v10 = vpop.permute.xlu2 %303 }
  0x77   : > { %v306_v11 = vpop.permute.xlu2 %305 }
  0x78   : > { %v309_v12 = vsel %vm307_vm2, %v304_v10, %v306_v11  ;;  %v320_v29 = vsel %vm199_vm0, %v306_v11, 0 }
  0x79   : > { %v317_v13 = vsel %vm199_vm0, %v309_v12, 0 }
  0x7a   : > { %342 = vmatpush.bf16.msrb.mxu3 %v317_v13 }
  0x7d   : > { %903 = vmatmul.msk.bf16.vlgmr.msrb.gmra.mxu3 %vm195_vm1, %v1028_v14 }
  0x7f   : > { %v367_v30 = vpop.permute.xlu2 %366 }
  0x86   : > { %v191_v15 = vpop.permute.xlu0 %190  ;;  %v189_v16 = vpop.permute.xlu1 %188 }
  0x87   : > { %v207_v17 = vsel %vm199_vm0, %v191_v15, 0  ;;  %v194_v18 = vsel %vm192_vm3, %v189_v16, %v191_v15  ;;  %v434_v39 = vpop.permute.xlu2 %433  ;;  %v921_v15 = vld [vmem:[%s1122_s1 + $0x1c] sm:$0xf] }
  0x88   : > { %242 = vmatpush.bf16.msra.mxu2 %v207_v17  ;;  %v204_v20 = vsel %vm199_vm0, %v194_v18, 0 }
  0x89   : > { %229 = vmatpush.bf16.msra.mxu1 %v204_v20 }
  0x8b   : > { %897 = vmatmul.msk.bf16.vlgmr.msra.gmra.mxu2 %vm195_vm1, %v894_v21 }
  0x8c   : > { %896 = vmatmul.msk.bf16.vlgmr.msra.gmra.mxu1 %vm195_vm1, %v894_v21 }
  0x8d   : > { %293 = vmatpush.bf16.msrb.mxu1 %v258_v19  ;;  %v925_v19 = vld [vmem:[%s1122_s1 + $0x20] sm:$0xf] }
  0x8e   : > { %v302_v22 = vpop.permute.xlu1 %301  ;;  %v187_v23 = vpop.permute.xlu0 %186 }
  0x8f   : > { %v193_v24 = vsel %vm192_vm3, %v187_v23, %v189_v16  ;;  %v308_v25 = vsel %vm307_vm2, %v302_v22, %v304_v10  ;;  %v562_v47 = vpop.permute.xlu2 %561  ;;  %vm828_vm2 = vcmask 416768   ;;  %vm830_vm3 = vcmask 703896  }
  0x90   : > { %v201_v27 = vsel %vm199_vm0, %v193_v24, 0  ;;  %v314_v28 = vsel %vm199_vm0, %v308_v25, 0 }
  0x91   : > { %216 = vmatpush.bf16.msra.mxu0 %v201_v27  ;;  %329 = vmatpush.bf16.msrb.mxu2 %v314_v28 }
  0x94   : > { %895 = vmatmul.msk.bf16.vlgmr.msra.gmra.mxu0 %vm195_vm1, %v894_v21 }
  0x95   : > { %280 = vmatpush.bf16.msrb.mxu0 %v255_v26 }
  0x96   : > { %v371_v31 = vpop.permute.xlu1 %370  ;;  %v369_v32 = vpop.permute.xlu0 %368 }
  0x97   : > { %v385_v33 = vsel %vm199_vm0, %v371_v31, 0  ;;  %v373_v34 = vsel %vm372_vm4, %v367_v30, %v369_v32  ;;  %v374_v35 = vsel %vm372_vm4, %v369_v32, %v371_v31  ;;  %v566_v53 = vpop.permute.xlu2 %565  ;;  %vm825_vm4 = vcmask 1047704  }
  0x98   : > { %v379_v36 = vsel %vm199_vm0, %v373_v34, 0  ;;  %v382_v37 = vsel %vm199_vm0, %v374_v35, 0  ;;  %420 = vmatpush.bf16.msra.mxu3 %v385_v33 }
  0x99   : > { %355 = vmatpush.bf16.msra.mxu0 %v320_v29  ;;  %394 = vmatpush.bf16.msra.mxu1 %v379_v36 }
  0x9a   : > { %407 = vmatpush.bf16.msra.mxu2 %v382_v37 }
  0x9b   : > { %902 = vmatmul.msk.bf16.vlgmr.msrb.gmra.mxu2 %vm195_vm1, %v1028_v14  ;;  %908 = vmatmul.msk.bf16.vlgmr.msra.gmra.mxu3 %vm195_vm1, %v905_v38  ;;  %v269_v20 = vpop.f32.mrf.mxu3 }
  0x9c   : > { %900 = vmatmul.msk.bf16.vlgmr.msrb.gmra.mxu1 %vm195_vm1, %v1019_v9 }
  0x9e   : > { %v432_v40 = vpop.permute.xlu1 %431  ;;  %v436_v41 = vpop.permute.xlu0 %435 }
  0x9f   : > { %v438_v42 = vsel %vm437_vm5, %v432_v40, %v434_v39  ;;  %v439_v43 = vsel %vm437_vm5, %v434_v39, %v436_v41  ;;  %v450_v44 = vsel %vm199_vm0, %v436_v41, 0  ;;  %v627_v63 = vpop.permute.xlu2 %626 }
  0xa0   : > { %v447_v45 = vsel %vm199_vm0, %v439_v43, 0  ;;  %485 = vmatpush.bf16.msrb.mxu2 %v450_v44  ;;  %v444_v46 = vsel %vm199_vm0, %v438_v42, 0 }
  0xa1   : > { %472 = vmatpush.bf16.msrb.mxu1 %v447_v45 }
  0xa3   : > { %v271_v21 = vpop.f32.mrf.mxu3 }
  0xa4   : > { %899 = vmatmul.msk.bf16.vlgmr.msrb.gmra.mxu0 %vm195_vm1, %v1019_v9  ;;  %v580_v9 = vsel %vm199_vm0, %v566_v53, 0 }
  0xa5   : > { %459 = vmatpush.bf16.msrb.mxu0 %v444_v46 }
  0xa6   : > { %v499_v48 = vpop.permute.xlu1 %498  ;;  %v497_v49 = vpop.permute.xlu0 %496 }
  0xa7   : > { %v503_v50 = vsel %vm502_vm6, %v497_v49, %v499_v48  ;;  %v694_v10 = vpop.permute.xlu2 %693 }
  0xa8   : > { %v509_v51 = vsel %vm199_vm0, %v503_v50, 0 }
  0xa9   : > { %524 = vmatpush.bf16.msrb.mxu3 %v509_v51 }
  0xab   : > { %907 = vmatmul.msk.bf16.vlgmr.msra.gmra.mxu2 %vm195_vm1, %v905_v38 }
  0xac   : > { %906 = vmatmul.msk.bf16.vlgmr.msra.gmra.mxu1 %vm195_vm1, %v905_v38  ;;  %914 = vmatmul.msk.bf16.vlgmr.msrb.gmra.mxu3 %vm195_vm1, %v913_v52 }
  0xae   : > { %v501_v54 = vpop.permute.xlu1 %500  ;;  %v564_v55 = vpop.permute.xlu0 %563 }
  0xaf   : > { %v504_v56 = vsel %vm502_vm6, %v499_v48, %v501_v54  ;;  %v515_v57 = vsel %vm199_vm0, %v501_v54, 0  ;;  %v568_v58 = vsel %vm567_vm7, %v562_v47, %v564_v55  ;;  %v569_v59 = vsel %vm567_vm7, %v564_v55, %v566_v53 }
  0xb0   : > { %v574_v60 = vsel %vm199_vm0, %v568_v58, 0  ;;  %v577_v61 = vsel %vm199_vm0, %v569_v59, 0  ;;  %550 = vmatpush.bf16.msra.mxu1 %v515_v57  ;;  %v512_v62 = vsel %vm199_vm0, %v504_v56, 0 }
  0xb1   : > { %589 = vmatpush.bf16.msra.mxu2 %v574_v60  ;;  %602 = vmatpush.bf16.msra.mxu3 %v577_v61 }
  0xb4   : > { %904 = vmatmul.msk.bf16.vlgmr.msra.gmra.mxu0 %vm195_vm1, %v1028_v14 }
  0xb5   : > { %537 = vmatpush.bf16.msra.mxu0 %v512_v62 }
  0xb6   : > { %v631_v0 = vpop.permute.xlu1 %630  ;;  %v629_v1 = vpop.permute.xlu0 %628 }
  0xb7   : > { %v645_v2 = vsel %vm199_vm0, %v631_v0, 0  ;;  %v633_v3 = vsel %vm632_vm8, %v627_v63, %v629_v1  ;;  %v634_v4 = vsel %vm632_vm8, %v629_v1, %v631_v0 }
  0xb8   : > { %680 = vmatpush.bf16.msrb.mxu3 %v645_v2  ;;  %v639_v6 = vsel %vm199_vm0, %v633_v3, 0  ;;  %v642_v7 = vsel %vm199_vm0, %v634_v4, 0 }
  0xbb   : > { %912 = vmatmul.msk.bf16.vlgmr.msrb.gmra.mxu2 %vm195_vm1, %v909_v5 }
  0xbc   : > { %911 = vmatmul.msk.bf16.vlgmr.msrb.gmra.mxu1 %vm195_vm1, %v909_v5  ;;  %919 = vmatmul.msk.bf16.vlgmr.msra.gmra.mxu3 %vm195_vm1, %v917_v8 }
  0xbd   : > { %654 = vmatpush.bf16.msrb.mxu1 %v639_v6  ;;  %667 = vmatpush.bf16.msrb.mxu2 %v642_v7 }
  0xbe   : > { %v696_v11 = vpop.permute.xlu0 %695  ;;  %v692_v16 = vpop.permute.xlu1 %691 }
  0xbf   : > { %v699_v12 = vsel %vm697_vm9, %v694_v10, %v696_v11  ;;  %v710_v14 = vsel %vm199_vm0, %v696_v11, 0  ;;  %v698_v17 = vsel %vm697_vm9, %v692_v16, %v694_v10 }
  0xc0   : > { %v707_v13 = vsel %vm199_vm0, %v699_v12, 0  ;;  %v704_v18 = vsel %vm199_vm0, %v698_v17, 0 }
  0xc4   : > { %910 = vmatmul.msk.bf16.vlgmr.msrb.gmra.mxu0 %vm195_vm1, %v909_v5 }
  0xc5   : > { %615 = vmatpush.bf16.msrb.mxu0 %v580_v9 }
  0xcb   : > { %918 = vmatmul.msk.bf16.vlgmr.msra.gmra.mxu2 %vm195_vm1, %v917_v8 }
  0xcc   : > { %916 = vmatmul.msk.bf16.vlgmr.msra.gmra.mxu1 %vm195_vm1, %v913_v52  ;;  %924 = vmatmul.msk.bf16.vlgmr.msrb.gmra.mxu3 %vm195_vm1, %v921_v15 }
  0xcd   : > { %745 = vmatpush.bf16.msra.mxu2 %v710_v14  ;;  %732 = vmatpush.bf16.msra.mxu1 %v707_v13 }
  0xd4   : > { %915 = vmatmul.msk.bf16.vlgmr.msra.gmra.mxu0 %vm195_vm1, %v913_v52 }
  0xd5   : > { %719 = vmatpush.bf16.msra.mxu0 %v704_v18 }
  0xdb   : > { %923 = vmatmul.msk.bf16.vlgmr.msrb.gmra.mxu2 %vm195_vm1, %v921_v15 }
  0xdc   : > { %922 = vmatmul.msk.bf16.vlgmr.msrb.gmra.mxu1 %vm195_vm1, %v921_v15 }
  0xe4   : > { %920 = vmatmul.msk.bf16.vlgmr.msrb.gmra.mxu0 %vm195_vm1, %v917_v8 }
  0xeb   : > { %928 = vmatmul.msk.bf16.vlgmr.msra.gmra.mxu2 %vm195_vm1, %v925_v19 }
  0xec   : > { %927 = vmatmul.msk.bf16.vlgmr.msra.gmra.mxu1 %vm195_vm1, %v925_v19 }
  0xf4   : > { %926 = vmatmul.msk.bf16.vlgmr.msra.gmra.mxu0 %vm195_vm1, %v925_v19  ;;  %vm809_vm1 = vcmask 154624  }
 0x100   : > { %v344_v22 = vpop.f32.mrf.mxu3 }
 0x108   : > { %v346_v24 = vpop.f32.mrf.mxu3 }
 0x109   : > { %v231_v23 = vpop.f32.mrf.mxu1 }
 0x10e   : > { %v244_v25 = vpop.f32.mrf.mxu2 }
 0x111   : > { %v218_v26 = vpop.f32.mrf.mxu0  ;;  %v233_v27 = vpop.f32.mrf.mxu1 }
 0x112   : > { %v270_v28 = vadd.f32 %v269_v20, %v218_v26 }
 0x116   : > { %v246_v29 = vpop.f32.mrf.mxu2 }
 0x119   : > { %v220_v30 = vpop.f32.mrf.mxu0  ;;  %v295_v31 = vpop.f32.mrf.mxu1 }
 0x11a   : > { %v296_v32 = vadd.f32 %v295_v31, %v244_v25 }
 0x11e   : > { %v331_v33 = vpop.f32.mrf.mxu2  ;;  %v422_v34 = vpop.f32.mrf.mxu3 }
 0x11f   : > { %v361_v35 = vadd.f32 %v331_v33, %v270_v28 }
 0x121   : > { %v282_v36 = vpop.f32.mrf.mxu0  ;;  %v297_v37 = vpop.f32.mrf.mxu1 }
 0x122   : > { %v283_v38 = vadd.f32 %v282_v36, %v231_v23  ;;  %v172_v23 = vld [vmem:[%s1123_s2] sm:$0x7] }
 0x123   : > { %v757_v28 = vperm.slane %v172_v23, 2  ;;  %v756_v31 = vperm.slane %v172_v23, 1 }
 0x124   : > { %v362_v39 = vadd.f32 %v344_v22, %v283_v38 }
 0x126   : > { %v333_v40 = vpop.f32.mrf.mxu2  ;;  %v424_v41 = vpop.f32.mrf.mxu3 }
 0x129   : > { %v284_v42 = vpop.f32.mrf.mxu0  ;;  %v396_v43 = vpop.f32.mrf.mxu1 }
 0x12a   : > { %v426_v11 = vadd.f32 %v396_v43, %v361_v35 }
 0x12e   : > { %v409_v44 = vpop.f32.mrf.mxu2 }
 0x12f   : > { %v526_v45 = vpop.f32.mrf.mxu3  ;;  %v427_v9 = vadd.f32 %v409_v44, %v362_v39 }
 0x131   : > { %v357_v46 = vpop.f32.mrf.mxu0  ;;  %v398_v47 = vpop.f32.mrf.mxu1 }
 0x132   : > { %v363_v48 = vadd.f32 %v357_v46, %v296_v32  ;;  %v755_v32 = vperm.slane %v172_v23, 0 }
 0x134   : > { %v428_v49 = vadd.f32 %v422_v34, %v363_v48 }
 0x136   : > { %v411_v50 = vpop.f32.mrf.mxu2 }
 0x137   : > { %v528_v51 = vpop.f32.mrf.mxu3 }
 0x139   : > { %v359_v52 = vpop.f32.mrf.mxu0  ;;  %v474_v53 = vpop.f32.mrf.mxu1 }
 0x13a   : > { %v492_v12 = vadd.f32 %v474_v53, %v427_v9 }
 0x13e   : > { %v487_v54 = vpop.f32.mrf.mxu2 }
 0x13f   : > { %v604_v55 = vpop.f32.mrf.mxu3  ;;  %v493_v10 = vadd.f32 %v487_v54, %v428_v49 }
 0x141   : > { %v461_v56 = vpop.f32.mrf.mxu0  ;;  %v476_v57 = vpop.f32.mrf.mxu1 }
 0x142   : > { %v491_v15 = vadd.f32 %v461_v56, %v426_v11 }
 0x144   : > { %v556_v20 = vadd.f32 %v526_v45, %v491_v15 }
 0x146   : > { %v489_v58 = vpop.f32.mrf.mxu2 }
 0x147   : > { %v606_v59 = vpop.f32.mrf.mxu3 }
 0x149   : > { %v463_v60 = vpop.f32.mrf.mxu0  ;;  %v552_v61 = vpop.f32.mrf.mxu1 }
 0x14a   : > { %v558_v14 = vadd.f32 %v552_v61, %v493_v10 }
 0x14e   : > { %v591_v62 = vpop.f32.mrf.mxu2 }
 0x14f   : > { %v682_v63 = vpop.f32.mrf.mxu3  ;;  %v621_v24 = vadd.f32 %v591_v62, %v556_v20 }
 0x151   : > { %v539_v0 = vpop.f32.mrf.mxu0  ;;  %v554_v1 = vpop.f32.mrf.mxu1 }
 0x152   : > { %v557_v16 = vadd.f32 %v539_v0, %v492_v12 }
 0x154   : > { %v622_v21 = vadd.f32 %v604_v55, %v557_v16 }
 0x156   : > { %v593_v2 = vpop.f32.mrf.mxu2 }
 0x157   : > { %v684_v3 = vpop.f32.mrf.mxu3 }
 0x159   : > { %v541_v4 = vpop.f32.mrf.mxu0  ;;  %v656_v5 = vpop.f32.mrf.mxu1 }
 0x15a   : > { %v686_v29 = vadd.f32 %v656_v5, %v621_v24 }
 0x15e   : > { %v669_v6 = vpop.f32.mrf.mxu2 }
 0x15f   : > { %v687_v25 = vadd.f32 %v669_v6, %v622_v21 }
 0x161   : > { %v617_v7 = vpop.f32.mrf.mxu0  ;;  %v658_v8 = vpop.f32.mrf.mxu1 }
 0x162   : > { %v623_v17 = vadd.f32 %v617_v7, %v558_v14 }
 0x164   : > { %v688_v22 = vadd.f32 %v682_v63, %v623_v17 }
 0x166   : > { %v671_v13 = vpop.f32.mrf.mxu2 }
 0x167   : > { %v970_v13 = vmov 0.0  }
 0x168   : > { %810 = vst.msk [vmem:[%s170_s25] sm:$0xff] %vm809_vm1, %v970_v13 }
 0x169   : > { %v619_v18 = vpop.f32.mrf.mxu0  ;;  %v734_v19 = vpop.f32.mrf.mxu1 }
 0x16a   : > { %v752_v30 = vadd.f32 %v734_v19, %v687_v25 }
 0x16c   : > { %v762_v37 = vmul.f32 %v756_v31, %v752_v30 }
 0x16e   : > { %v747_v26 = vpop.f32.mrf.mxu2 }
 0x16f   : > { %v753_v27 = vadd.f32 %v747_v26, %v688_v22 }
 0x171   : > { %v721_v33 = vpop.f32.mrf.mxu0  ;;  %v736_v34 = vpop.f32.mrf.mxu1  ;;  %v763_v36 = vmul.f32 %v757_v28, %v753_v27 }
 0x172   : > { %v751_v35 = vadd.f32 %v721_v33, %v686_v29 }
 0x173   : > { %v766_v41 = vsel %vm765_vm10, %v763_v36, 0.0 }
 0x174   : > { %v761_v38 = vmul.f32 %v755_v32, %v751_v35 }
 0x176   : > { %v749_v39 = vpop.f32.mrf.mxu2  ;;  %v764_v40 = vadd.f32 %v762_v37, %v761_v38 }
 0x178   : > { %v767_v42 = vadd.f32 %v766_v41, %v764_v40 }
 0x179   : > { %v723_v43 = vpop.f32.mrf.mxu0 }
 0x17a   : > { %768 = vadd.xlane.f32.xlu0 %v767_v42 }
 0x1ed   : > { %v769_v44 = vpop.xlane.xlu0 %768 }
 0x1ee   : > { %v770_v45 = vmul.f32 0.00390625, %v769_v44 }
 0x1f0   : > { %v771_v46 = vsub.f32 %v751_v35, %v770_v45  ;;  %v772_v47 = vsub.f32 %v752_v30, %v770_v45  ;;  %v773_v48 = vsub.f32 %v753_v27, %v770_v45 }
 0x1f2   : > { %v774_v49 = vmul.f32 %v771_v46, %v755_v32  ;;  %v775_v50 = vmul.f32 %v772_v47, %v756_v31  ;;  %v776_v51 = vmul.f32 %v773_v48, %v757_v28 }
 0x1f4   : > { %v777_v52 = vmul.f32 %v774_v49, %v774_v49  ;;  %v778_v53 = vmul.f32 %v775_v50, %v775_v50  ;;  %v779_v54 = vmul.f32 %v776_v51, %v776_v51 }
 0x1f6   : > { %v780_v55 = vadd.f32 %v778_v53, %v777_v52  ;;  %v781_v56 = vsel %vm765_vm10, %v779_v54, 0.0 }
 0x1f8   : > { %v782_v57 = vadd.f32 %v781_v56, %v780_v55 }
 0x1fa   : > { %783 = vadd.xlane.f32.xlu1 %v782_v57 }
 0x26d   : > { %v784_v58 = vpop.xlane.xlu1 %783 }
 0x26e   : > { %v785_v59 = vmul.f32 0.00390625, %v784_v58 }
 0x270   : > { %v786_v60 = vadd.f32 1e-05, %v785_v59 }
 0x272   : > { %951 = vrsqrt.f32 %v786_v60  ;;  %vm793_vm12 = vweird.f32 %v786_v60 }
 0x278   : > { %v952_v61 = vpop.eup %951 }
 0x279   : > { %v788_v62 = vmul.f32 %v952_v61, %v786_v60  ;;  %vm794_vm11 = vweird.f32 %v952_v61 }
 0x27a   : > { %vm795_vm13 = vmor %vm793_vm12, %vm794_vm11 }
 0x27b   : > { %v789_v63 = vmul.f32 %v952_v61, %v788_v62 }
 0x27d   : > { %v790_v0 = vmul.f32 0.5, %v789_v63 }
 0x27f   : > { %v791_v1 = vsub.f32 1.5, %v790_v0 }
 0x281   : > { %v792_v2 = vmul.f32 %v952_v61, %v791_v1 }
 0x283   : > { %v796_v3 = vsel %vm795_vm13, %v952_v61, %v792_v2 }
 0x284   : > { %v798_v4 = vmul.f32 %v796_v3, %v775_v50  ;;  %v799_v7 = vmul.f32 %v796_v3, %v776_v51  ;;  %v797_v10 = vmul.f32 %v796_v3, %v774_v49 }
 0x286   : > { %vm801_vm14 = vcmp.gt.f32.partialorder %v798_v4, 0.0  ;;  %v804_v5 = vmul.f32 0.01, %v798_v4  ;;  %v805_v8 = vmul.f32 0.01, %v799_v7  ;;  %vm802_vm15 = vcmp.gt.f32.partialorder %v799_v7, 0.0 }
 0x287   : > { %v803_v11 = vmul.f32 0.01, %v797_v10  ;;  %vm800_vm0 = vcmp.gt.f32.partialorder %v797_v10, 0.0 }
 0x288   : > { %v807_v6 = vsel %vm801_vm14, %v798_v4, %v804_v5  ;;  %v808_v9 = vsel %vm802_vm15, %v799_v7, %v805_v8 }
 0x289   : > { %816 = vrot.lane.b32.xlu2 %v807_v6, %s969_s21  ;;  %v806_v12 = vsel %vm800_vm0, %v797_v10, %v803_v11 }
 0x291   : > { %818 = vrot.lane.b32.xlu2 %v808_v9, %s969_s21 }
 0x299   : > { %814 = vrot.lane.b32.xlu2 %v806_v12, %s969_s21 }
 0x2e3   : > { %v817_v14 = vpop.permute.xlu2 %816 }
 0x2eb   : > { %v819_v15 = vpop.permute.xlu2 %818 }
 0x2ec   : > { %v821_v16 = vsel %vm809_vm1, %v817_v14, %v819_v15 }
 0x2ed   : > { %829 = vst.msk [vmem:[%s170_s25 + $0x10] sm:$0xff] %vm828_vm2, %v821_v16 }
 0x2ee   : > { %831 = vst.msk [vmem:[%s170_s25 + $0x10] sm:$0xff] %vm830_vm3, %v970_v13 }
 0x2f3   : > { %v815_v17 = vpop.permute.xlu2 %814 }
 0x2f4   : > { %v820_v18 = vsel %vm809_vm1, %v815_v17, %v817_v14  ;;  %826 = vst.msk [vmem:[%s170_s25] sm:$0xff] %vm825_vm4, %v815_v17 }
 0x2f5   : > { %827 = vst [vmem:[%s170_s25 + $0x8] sm:$0xff] %v820_v18 }
 0x2f6 PF: > { %s13_s12 = sadd.s32 1, %s959_s12  }
 0x2f7   : > { %p10_p4 = scmp.ge.s32.totalorder %s13_s12, 4  }
 0x2f9   :  { %12 = sbr.rel (!%p10_p4) target bundleno = 1 (0x1), region = 70 }

// kernel: unetr_basic_block_dyqkv_forward.2
= control target key start
LH: loop header
LB: loop body
LE: loop exit
PB: predicated region body
PF: predicated region fallthrough
CT: control target
= control target key end

     0   :  { %s1425_s18 = smov 0   ;;  %s1605_s0 = inlined_call_operand.vmem [shape: bf16[2,4,342], index: 0, kind: input, shape index: {}]   ;;  %s1606_s1 = inlined_call_operand.vmem [shape: bf16[9,8,4], index: 1, kind: input, shape index: {}]   ;;  %s1607_s2 = inlined_call_operand.vmem [shape: f32[1,288], index: 2, kind: input, shape index: {}]   ;;  %s1608_s3 = inlined_call_operand.vmem [shape: f32[2,9,4,1], index: 3, kind: input, shape index: {}]   ;;  %s1609_s4 = inlined_call_operand.vmem [shape: f32[2,8,1], index: 4, kind: input, shape index: {}]   ;;  %s1610_s5 = inlined_call_operand.vmem [shape: bf16[2,8,342], index: 5, kind: output, shape index: {}]  }
   0x1 LB: > { %s1295_s19 = sadd.s32 4294967295, %s1382_s18   ;;  %p1299_p0 = scmp.ge.s32.totalorder %s1382_s18, 1  ;;  %s1382_s18 = sphi %s1425_s18, %s15_s18  }
   0x2   : > { %p206_p1 = scmp.lt.s32.totalorder %s1382_s18, 3 }
   0x4   : > { %p207_p2 = pnand %p1299_p0, %p206_p1 }
   0x5   : > { %p243_p3 = scmp.lt.s32.totalorder (!%p207_p2), %s1295_s19, 1  ;;  %s1386_s28 = smov (!%p207_p2), 127  }
   0x6   : > { %210 = sbr.rel (%p207_p2) target bundleno = 951 (0x3b7), region = 40  ;;  %s1387_s29 = smov (!%p207_p2), 126  }
   0x7   : > { %s1388_s30 = smov (!%p207_p2), 110   ;;  %s1389_s6 = smov (!%p207_p2), 109  }
   0x8   : > { %s1390_s7 = smov (!%p207_p2), 108   ;;  %s1391_s8 = smov (!%p207_p2), 92  }
   0x9   : > { %s1392_s9 = smov (!%p207_p2), 91   ;;  %s1393_s16 = smov (!%p207_p2), 90  }
   0xb   : > { %v1384_v0 = vmov 0   ;;  %s1612_s19 = smov (!%p243_p3, %s1295_s19), 1  ;;  %v1385_v9 = vmov 839922192   ;;  %vm342_vm0 = vcmask 1041408   ;;  %vm338_vm1 = vcmask 31744  }
   0xc   : > { %1371 = vset.pattern.permute.xlu0 %v1384_v0  ;;  %1372 = vset.pattern.permute.xlu1 %v1384_v0  ;;  %s1350_s20 = smul.u32 36, %s1612_s19  ;;  %v273_v10 = vunpack.c.l.s4 %v1385_v9  ;;  %vm335_vm2 = vcmask 1039360   ;;  %vm483_vm3 = vcmask 1031168   ;;  %vm581_vm4 = vcmask 900096   ;;  %s1302_s17 = sshll.u32 %s1612_s19, 3 }
   0xd   : > { %1373 = vset.pattern.permute.xlu2 %v1384_v0  ;;  %s1349_s24 = smul.u32 6, %s1612_s19  ;;  %vm679_vm5 = vcmask 891904   ;;  %vm777_vm6 = vcmask 883712   ;;  %vm875_vm7 = vcmask 752640   ;;  %vm973_vm8 = vcmask 744448  }
   0xe   : > { %s1442_s23 = scalar_lea.vmem %s1608_s3, %s1350_s20  ;;  %v1459_v12 = vunpack.c.0.s8 %v273_v10  ;;  %vm1071_vm9 = vcmask 736256   ;;  %vm1148_vm10 = vcmask 261120   ;;  %s1351_s12 = smul.u32 12, %s1612_s19  ;;  %vm1192_vm11 = vcmask 150528  }
   0xf   : > { %v267_v1 = vld [vmem:[%s1442_s23] sm:$0xf]  ;;  %v1312_v2 = vld [vmem:[%s1442_s23 + $0x8] sm:$0xf]  ;;  %v1322_v3 = vld [vmem:[%s1442_s23 + $0x10] sm:$0xf]  ;;  %s1456_s27 = scalar_lea.vmem %s1605_s0, %s1349_s24  ;;  %s256_s24 = scalar_lea.vmem %s1609_s4, %s1302_s17 }
  0x10   : > { %270 = vperm.xlu0 %1371, %v267_v1   ;;  %449 = vperm.xlu1 %1372, %v1312_v2   ;;  %v1304_v4 = vld [vmem:[%s1442_s23 + $0x4] sm:$0xf]  ;;  %v1317_v5 = vld [vmem:[%s1442_s23 + $0xc] sm:$0xf]  ;;  %v1327_v6 = vld [vmem:[%s1442_s23 + $0x14] sm:$0xf]  ;;  %s1594_s15 = scalar_lea.vmem %s1610_s5, %s1351_s12 }
  0x11   : > { %645 = vperm.xlu2 %1373, %v1322_v3   ;;  %v1332_v7 = vld [vmem:[%s1442_s23 + $0x18] sm:$0xf]  ;;  %v1337_v8 = vld [vmem:[%s1442_s23 + $0x1c] sm:$0xf]  ;;  %v264_v11 = vld [vmem:[%s1456_s27] sm:$0x3f] }
  0x12   : > { %v265_v13 = vunpack.c.l.bf16 %v264_v11  ;;  %v266_v14 = vunpack.c.h.bf16 %v264_v11  ;;  %v294_v19 = vld [vmem:[%s1456_s27] sm:$0x3f]  ;;  %1193 = vst.msk [vmem:[%s1594_s15] sm:$0xf] %vm1192_vm11, %v1384_v0  ;;  %s1394_s19 = smov 19  }
  0x13   : > { %v295_v20 = vunpack.c.l.bf16 %v294_v19  ;;  %v296_v21 = vunpack.c.h.bf16 %v294_v19  ;;  %v442_v25 = vld [vmem:[%s1456_s27] sm:$0x3f] }
  0x14   : > { %v443_v31 = vunpack.c.l.bf16 %v442_v25  ;;  %v444_v34 = vunpack.c.h.bf16 %v442_v25  ;;  %v540_v39 = vld [vmem:[%s1456_s27] sm:$0x3f] }
  0x15   : > { %v541_v44 = vunpack.c.l.bf16 %v540_v39  ;;  %v542_v47 = vunpack.c.h.bf16 %v540_v39  ;;  %v638_v51 = vld [vmem:[%s1456_s27] sm:$0x3f] }
  0x16   : > { %v639_v56 = vunpack.c.l.bf16 %v638_v51  ;;  %v640_v59 = vunpack.c.h.bf16 %v638_v51  ;;  %v736_v63 = vld [vmem:[%s1456_s27] sm:$0x3f] }
  0x17   : > { %v738_v9 = vunpack.c.h.bf16 %v736_v63  ;;  %v932_v25 = vld [vmem:[%s1456_s27] sm:$0x3f] }
  0x18   : > { %301 = vperm.xlu0 %1371, %v1304_v4   ;;  %547 = vperm.xlu1 %1372, %v1317_v5  }
  0x20   : > { %743 = vperm.xlu0 %1371, %v1327_v6  }
  0x28   : > { %841 = vperm.xlu0 %1371, %v1332_v7   ;;  %v737_v7 = vunpack.c.l.bf16 %v736_v63 }
  0x30   : > { %939 = vperm.xlu0 %1371, %v1337_v8  }
  0x6b   : > { %v646_v50 = vpop.permute.xlu2 %645 }
  0x6c   : > { %v650_v57 = vperm.slane %v646_v50, %v1459_v12 }
  0x6e   : > { %v652_v61 = vmul.f32 %v650_v57, %v639_v56  ;;  %v653_v62 = vmul.f32 %v650_v57, %v640_v59  ;;  %v293_v56 = vld [vmem:[%s1606_s1] sm:$0xf]  ;;  %v1305_v59 = vld [vmem:[%s1606_s1 + $0x4] sm:$0xf] }
  0x82   : > { %v271_v15 = vpop.permute.xlu0 %270  ;;  %v450_v23 = vpop.permute.xlu1 %449 }
  0x83   : > { %v275_v16 = vperm.slane %v271_v15, %v1459_v12  ;;  %v454_v32 = vperm.slane %v450_v23, %v1459_v12 }
  0x85   : > { %v277_v17 = vmul.f32 %v275_v16, %v265_v13  ;;  %v278_v18 = vmul.f32 %v275_v16, %v266_v14  ;;  %v456_v36 = vmul.f32 %v454_v32, %v443_v31  ;;  %v457_v37 = vmul.f32 %v454_v32, %v444_v34  ;;  %v834_v13 = vld [vmem:[%s1456_s27] sm:$0x3f] }
  0x86   : > { %v836_v23 = vunpack.c.h.bf16 %v834_v13 }
  0x87   : > { %281 = vst [vmem:[#allocation1] ss:$2 sm:$0xff] %v277_v17 }
  0x88   : > { %283 = vst [vmem:[#allocation1 + $0x10] ss:$2 sm:$0xff] %v278_v18 }
  0x8a   : > { %v302_v22 = vpop.permute.xlu0 %301  ;;  %v548_v38 = vpop.permute.xlu1 %547 }
  0x8b   : > { %v306_v24 = vperm.slane %v302_v22, %v1459_v12  ;;  %v552_v45 = vperm.slane %v548_v38, %v1459_v12  ;;  %v934_v38 = vunpack.c.h.bf16 %v932_v25 }
  0x8d   : > { %v308_v26 = vmul.f32 %v306_v24, %v295_v20  ;;  %v309_v27 = vmul.f32 %v306_v24, %v296_v21  ;;  %v554_v48 = vmul.f32 %v552_v45, %v541_v44  ;;  %v555_v49 = vmul.f32 %v552_v45, %v542_v47 }
  0x8e   : > { %v284_v28 = vld.sshfl [vmem:[#allocation1] sm:$0xff pattern:$0x75316420]  ;;  %v1465_v29 = vld.sshfl [vmem:[#allocation1 + $0x8] sm:$0xff pattern:$0x75316420]  ;;  %v835_v21 = vunpack.c.l.bf16 %v834_v13 }
  0x8f   : > { %v1467_v30 = vld.sshfl [vmem:[#allocation1 + $0x10] sm:$0xff pattern:$0x75316420]  ;;  %312 = vst [vmem:[#allocation1] ss:$2 sm:$0xff] %v308_v26  ;;  %v290_v33 = vpack.c.bf16 %v284_v28, %v284_v28 }
  0x90   : > { %314 = vst [vmem:[#allocation1 + $0x10] ss:$2 sm:$0xff] %v309_v27  ;;  %v1342_v26 = vld [vmem:[%s1442_s23 + $0x20] sm:$0xf] }
  0x91   : > { %v395_v35 = vsel %vm342_vm0, %v290_v33, 0 }
  0x92   : > { %410 = vmatpush.bf16.msra.mxu3 %v395_v35  ;;  %v744_v60 = vpop.permute.xlu0 %743 }
  0x93   : > { %v748_v8 = vperm.slane %v744_v60, %v1459_v12  ;;  %v292_v60 = vpack.c.bf16 %v1467_v30, %v1467_v30 }
  0x95   : > { %v750_v11 = vmul.f32 %v748_v8, %v737_v7  ;;  %v751_v14 = vmul.f32 %v748_v8, %v738_v9  ;;  %1309 = vmatmul.msk.bf16.vlgmr.msra.gmra.mxu3 %vm338_vm1, %v293_v56  ;;  %v1030_v8 = vld [vmem:[%s1456_s27] sm:$0x3f] }
  0x96   : > { %v315_v40 = vld.sshfl [vmem:[#allocation1] sm:$0xff pattern:$0x75316420]  ;;  %v316_v41 = vld.sshfl [vmem:[#allocation1 + $0x8] sm:$0xff pattern:$0x75316420]  ;;  %v1031_v9 = vunpack.c.l.bf16 %v1030_v8 }
  0x97   : > { %v317_v42 = vld.sshfl [vmem:[#allocation1 + $0x10] sm:$0xff pattern:$0x75316420]  ;;  %v321_v43 = vpack.c.bf16 %v315_v40, %v315_v40  ;;  %460 = vst [vmem:[#allocation1] ss:$2 sm:$0xff] %v456_v36  ;;  %v322_v58 = vpack.c.bf16 %v316_v41, %v316_v41  ;;  %v933_v36 = vunpack.c.l.bf16 %v932_v25 }
  0x98   : > { %462 = vst [vmem:[#allocation1 + $0x10] ss:$2 sm:$0xff] %v457_v37  ;;  %v323_v46 = vpack.c.bf16 %v317_v42, %v317_v42 }
  0x99   : > { %329 = vrot.lane.b32.xlu1 %v321_v43, %s1386_s28 }
  0x9a   : > { %333 = vrot.lane.b32.xlu2 %v323_v46, %s1386_s28  ;;  %v842_v10 = vpop.permute.xlu0 %841 }
  0x9b   : > { %v846_v22 = vperm.slane %v842_v10, %v1459_v12  ;;  %v1032_v10 = vunpack.c.h.bf16 %v1030_v8 }
  0x9d   : > { %v848_v24 = vmul.f32 %v846_v22, %v835_v21  ;;  %v849_v28 = vmul.f32 %v846_v22, %v836_v23 }
  0x9e   : > { %v463_v52 = vld.sshfl [vmem:[#allocation1] sm:$0xff pattern:$0x75316420]  ;;  %v464_v53 = vld.sshfl [vmem:[#allocation1 + $0x8] sm:$0xff pattern:$0x75316420] }
  0x9f   : > { %v465_v54 = vld.sshfl [vmem:[#allocation1 + $0x10] sm:$0xff pattern:$0x75316420]  ;;  %v469_v55 = vpack.c.bf16 %v463_v52, %v463_v52  ;;  %558 = vst [vmem:[#allocation1] ss:$2 sm:$0xff] %v554_v48  ;;  %v470_v2 = vpack.c.bf16 %v464_v53, %v464_v53 }
  0xa0   : > { %560 = vst [vmem:[#allocation1 + $0x10] ss:$2 sm:$0xff] %v555_v49  ;;  %v471_v1 = vpack.c.bf16 %v465_v54, %v465_v54 }
  0xa1   : > { %477 = vrot.lane.b32.xlu1 %v469_v55, %s1387_s29 }
  0xa2   : > { %331 = vrot.lane.b32.xlu2 %v322_v58, %s1386_s28  ;;  %v940_v31 = vpop.permute.xlu0 %939 }
  0xa3   : > { %v944_v37 = vperm.slane %v940_v31, %v1459_v12 }
  0xa5   : > { %v946_v39 = vmul.f32 %v944_v37, %v933_v36  ;;  %v947_v40 = vmul.f32 %v944_v37, %v934_v38 }
  0xa6   : > { %v562_v3 = vld.sshfl [vmem:[#allocation1 + $0x8] sm:$0xff pattern:$0x75316420]  ;;  %v561_v4 = vld.sshfl [vmem:[#allocation1] sm:$0xff pattern:$0x75316420] }
  0xa7   : > { %v563_v5 = vld.sshfl [vmem:[#allocation1 + $0x10] sm:$0xff pattern:$0x75316420]  ;;  %656 = vst [vmem:[#allocation1] ss:$2 sm:$0xff] %v652_v61  ;;  %v567_v18 = vpack.c.bf16 %v561_v4, %v561_v4  ;;  %v568_v20 = vpack.c.bf16 %v562_v3, %v562_v3  ;;  %v291_v3 = vpack.c.bf16 %v1465_v29, %v1465_v29 }
  0xa8   : > { %v569_v6 = vpack.c.bf16 %v563_v5, %v563_v5  ;;  %658 = vst [vmem:[#allocation1 + $0x10] ss:$2 sm:$0xff] %v653_v62 }
  0xa9   : > { %481 = vrot.lane.b32.xlu1 %v471_v1, %s1387_s29  ;;  %v401_v1 = vsel %vm342_vm0, %v292_v60, 0  ;;  %v398_v7 = vsel %vm342_vm0, %v291_v3, 0 }
  0xaa   : > { %579 = vrot.lane.b32.xlu0 %v569_v6, %s1388_s30  ;;  %479 = vrot.lane.b32.xlu2 %v470_v2, %s1387_s29 }
  0xae   : > { %v659_v15 = vld.sshfl [vmem:[#allocation1] sm:$0xff pattern:$0x75316420]  ;;  %v660_v16 = vld.sshfl [vmem:[#allocation1 + $0x8] sm:$0xff pattern:$0x75316420] }
  0xaf   : > { %v661_v17 = vld.sshfl [vmem:[#allocation1 + $0x10] sm:$0xff pattern:$0x75316420]  ;;  %754 = vst [vmem:[#allocation1] ss:$2 sm:$0xff] %v750_v11  ;;  %v665_v27 = vpack.c.bf16 %v659_v15, %v659_v15  ;;  %v666_v41 = vpack.c.bf16 %v660_v16, %v660_v16 }
  0xb0   : > { %v667_v19 = vpack.c.bf16 %v661_v17, %v661_v17  ;;  %756 = vst [vmem:[#allocation1 + $0x10] ss:$2 sm:$0xff] %v751_v14  ;;  %v1313_v16 = vld [vmem:[%s1606_s1 + $0x8] sm:$0xf] }
  0xb1   : > { %575 = vrot.lane.b32.xlu1 %v567_v18, %s1388_s30 }
  0xb2   : > { %677 = vrot.lane.b32.xlu0 %v667_v19, %s1389_s6  ;;  %577 = vrot.lane.b32.xlu2 %v568_v20, %s1388_s30 }
  0xb6   : > { %v757_v32 = vld.sshfl [vmem:[#allocation1] sm:$0xff pattern:$0x75316420]  ;;  %v758_v33 = vld.sshfl [vmem:[#allocation1 + $0x8] sm:$0xff pattern:$0x75316420] }
  0xb7   : > { %v763_v34 = vpack.c.bf16 %v757_v32, %v757_v32  ;;  %852 = vst [vmem:[#allocation1] ss:$2 sm:$0xff] %v848_v24  ;;  %v759_v35 = vld.sshfl [vmem:[#allocation1 + $0x10] sm:$0xff pattern:$0x75316420]  ;;  %v764_v45 = vpack.c.bf16 %v758_v33, %v758_v33 }
  0xb8   : > { %854 = vst [vmem:[#allocation1 + $0x10] ss:$2 sm:$0xff] %v849_v28  ;;  %v765_v49 = vpack.c.bf16 %v759_v35, %v759_v35 }
  0xb9   : > { %673 = vrot.lane.b32.xlu1 %v665_v27, %s1389_s6 }
  0xba   : > { %1037 = vperm.xlu2 %1373, %v1342_v26   ;;  %771 = vrot.lane.b32.xlu0 %v763_v34, %s1390_s7 }
  0xbe   : > { %v856_v42 = vld.sshfl [vmem:[#allocation1 + $0x8] sm:$0xff pattern:$0x75316420]  ;;  %v855_v43 = vld.sshfl [vmem:[#allocation1] sm:$0xff pattern:$0x75316420] }
  0xbf   : > { %v862_v44 = vpack.c.bf16 %v856_v42, %v856_v42  ;;  %950 = vst [vmem:[#allocation1] ss:$2 sm:$0xff] %v946_v39  ;;  %v857_v46 = vld.sshfl [vmem:[#allocation1 + $0x10] sm:$0xff pattern:$0x75316420]  ;;  %v861_v50 = vpack.c.bf16 %v855_v43, %v855_v43 }
  0xc0   : > { %952 = vst [vmem:[#allocation1 + $0x10] ss:$2 sm:$0xff] %v947_v40  ;;  %v863_v53 = vpack.c.bf16 %v857_v46, %v857_v46  ;;  %v1318_v42 = vld [vmem:[%s1606_s1 + $0xc] sm:$0xf] }
  0xc1   : > { %773 = vrot.lane.b32.xlu1 %v764_v45, %s1390_s7 }
  0xc2   : > { %675 = vrot.lane.b32.xlu2 %v666_v41, %s1389_s6  ;;  %871 = vrot.lane.b32.xlu0 %v862_v44, %s1391_s8  ;;  %v1128_v44 = vld [vmem:[%s256_s24] sm:$0xff] }
  0xc6   : > { %v954_v47 = vld.sshfl [vmem:[#allocation1 + $0x8] sm:$0xff pattern:$0x75316420]  ;;  %v953_v54 = vld.sshfl [vmem:[#allocation1] sm:$0xff pattern:$0x75316420] }
  0xc7   : > { %v960_v48 = vpack.c.bf16 %v954_v47, %v954_v47  ;;  %v955_v51 = vld.sshfl [vmem:[#allocation1 + $0x10] sm:$0xff pattern:$0x75316420]  ;;  %v959_v55 = vpack.c.bf16 %v953_v54, %v953_v54 }
  0xc8   : > { %v961_v52 = vpack.c.bf16 %v955_v51, %v955_v51 }
  0xc9   : > { %775 = vrot.lane.b32.xlu1 %v765_v49, %s1390_s7 }
  0xca   : > { %869 = vrot.lane.b32.xlu2 %v861_v50, %s1391_s8  ;;  %969 = vrot.lane.b32.xlu0 %v960_v48, %s1392_s9 }
  0xd1   : > { %971 = vrot.lane.b32.xlu1 %v961_v52, %s1392_s9 }
  0xd2   : > { %873 = vrot.lane.b32.xlu2 %v863_v53, %s1391_s8 }
  0xda   : > { %967 = vrot.lane.b32.xlu2 %v959_v55, %s1392_s9 }
  0xf4   : > { %v334_v57 = vpop.permute.xlu2 %333 }
  0xf5   : > { %v350_v58 = vsel %vm342_vm0, %v334_v57, 0 }
  0xf6   : > { %385 = vmatpush.bf16.msra.mxu2 %v350_v58  ;;  %v1323_v58 = vld [vmem:[%s1606_s1 + $0x10] sm:$0xf] }
  0xf9   : > { %1308 = vmatmul.msk.bf16.vlgmr.msra.gmra.mxu2 %vm338_vm1, %v1305_v59 }
  0xfc   : > { %v332_v61 = vpop.permute.xlu2 %331 }
  0xfd   : > { %v337_v62 = vsel %vm335_vm2, %v332_v61, %v334_v57 }
  0xfe   : > { %v347_v63 = vsel %vm342_vm0, %v337_v62, 0 }
  0xff   : > { %372 = vmatpush.bf16.msra.mxu1 %v347_v63 }
 0x102   : > { %1307 = vmatmul.msk.bf16.vlgmr.msra.gmra.mxu1 %vm338_vm1, %v1305_v59 }
 0x103   : > { %436 = vmatpush.bf16.msrb.mxu1 %v401_v1 }
 0x104   : > { %v480_v2 = vpop.permute.xlu2 %479 }
 0x10b   : > { %v330_v4 = vpop.permute.xlu1 %329 }
 0x10c   : > { %v578_v5 = vpop.permute.xlu2 %577  ;;  %v336_v6 = vsel %vm335_vm2, %v330_v4, %v332_v61  ;;  %v1328_v4 = vld [vmem:[%s1606_s1 + $0x14] sm:$0xf]  ;;  %vm1208_vm2 = vcmask 1043608  }
 0x10d   : > { %v344_v30 = vsel %vm342_vm0, %v336_v6, 0 }
 0x10e   : > { %359 = vmatpush.bf16.msra.mxu0 %v344_v30 }
 0x111   : > { %1306 = vmatmul.msk.bf16.vlgmr.msra.gmra.mxu0 %vm338_vm1, %v1305_v59 }
 0x112   : > { %423 = vmatpush.bf16.msrb.mxu0 %v398_v7  ;;  %1311 = vmatmul.msk.bf16.vlgmr.msrb.gmra.mxu1 %vm338_vm1, %v293_v56 }
 0x113   : > { %v478_v11 = vpop.permute.xlu1 %477 }
 0x114   : > { %v1038_v13 = vpop.permute.xlu2 %1037  ;;  %v484_v29 = vsel %vm483_vm3, %v478_v11, %v480_v2 }
 0x115   : > { %v1042_v14 = vperm.slane %v1038_v13, %v1459_v12  ;;  %v490_v15 = vsel %vm342_vm0, %v484_v29, 0 }
 0x116   : > { %505 = vmatpush.bf16.msrb.mxu2 %v490_v15 }
 0x117   : > { %v1044_v17 = vmul.f32 %v1042_v14, %v1031_v9  ;;  %v1045_v18 = vmul.f32 %v1042_v14, %v1032_v10  ;;  %v1333_v9 = vld [vmem:[%s1606_s1 + $0x18] sm:$0xf]  ;;  %v1338_v10 = vld [vmem:[%s1606_s1 + $0x1c] sm:$0xf] }
 0x118   : > { %v412_v11 = vpop.f32.mrf.mxu3 }
 0x119   : > { %1048 = vst [vmem:[#allocation1] ss:$2 sm:$0xff] %v1044_v17  ;;  %1314 = vmatmul.msk.bf16.vlgmr.msrb.gmra.mxu2 %vm338_vm1, %v1313_v16 }
 0x11a   : > { %1050 = vst [vmem:[#allocation1 + $0x10] ss:$2 sm:$0xff] %v1045_v18 }
 0x11b   : > { %v482_v19 = vpop.permute.xlu1 %481 }
 0x11c   : > { %v580_v20 = vpop.permute.xlu0 %579  ;;  %v496_v21 = vsel %vm342_vm0, %v482_v19, 0  ;;  %v485_v12 = vsel %vm483_vm3, %v480_v2, %v482_v19  ;;  %v676_v26 = vpop.permute.xlu2 %675  ;;  %vm1209_vm3 = vcmask 1047556  }
 0x11d   : > { %v583_v22 = vsel %vm581_vm4, %v578_v5, %v580_v20  ;;  %531 = vmatpush.bf16.msra.mxu0 %v496_v21  ;;  %v493_v23 = vsel %vm342_vm0, %v485_v12, 0  ;;  %v594_v25 = vsel %vm342_vm0, %v580_v20, 0 }
 0x11e   : > { %v591_v24 = vsel %vm342_vm0, %v583_v22, 0  ;;  %518 = vmatpush.bf16.msrb.mxu3 %v493_v23 }
 0x11f   : > { %616 = vmatpush.bf16.msra.mxu2 %v591_v24 }
 0x120   : > { %v1052_v27 = vld.sshfl [vmem:[#allocation1 + $0x8] sm:$0xff pattern:$0x75316420]  ;;  %v1051_v28 = vld.sshfl [vmem:[#allocation1] sm:$0xff pattern:$0x75316420]  ;;  %v414_v29 = vpop.f32.mrf.mxu3 }
 0x121   : > { %1310 = vmatmul.msk.bf16.vlgmr.msrb.gmra.mxu0 %vm338_vm1, %v293_v56  ;;  %1315 = vmatmul.msk.bf16.vlgmr.msrb.gmra.mxu3 %vm338_vm1, %v1313_v16  ;;  %v1058_v31 = vpack.c.bf16 %v1052_v27, %v1052_v27  ;;  %v1053_v32 = vld.sshfl [vmem:[#allocation1 + $0x10] sm:$0xff pattern:$0x75316420]  ;;  %v1057_v33 = vpack.c.bf16 %v1051_v28, %v1051_v28 }
 0x122   : > { %629 = vmatpush.bf16.msra.mxu3 %v594_v25  ;;  %v1059_v34 = vpack.c.bf16 %v1053_v32, %v1053_v32  ;;  %v1343_v32 = vld [vmem:[%s1606_s1 + $0x20] sm:$0xf] }
 0x123   : > { %1067 = vrot.lane.b32.xlu2 %v1058_v31, %s1393_s16  ;;  %1065 = vrot.lane.b32.xlu1 %v1057_v33, %s1393_s16  ;;  %v576_v35 = vpop.permute.xlu1 %575 }
 0x124   : > { %1069 = vrot.lane.b32.xlu0 %v1059_v34, %s1393_s16  ;;  %v678_v36 = vpop.permute.xlu0 %677  ;;  %v582_v37 = vsel %vm581_vm4, %v576_v35, %v578_v5  ;;  %v870_v43 = vpop.permute.xlu2 %869  ;;  %vm1203_vm4 = vcmask 154624  }
 0x125   : > { %v681_v38 = vsel %vm679_vm5, %v676_v26, %v678_v36  ;;  %v692_v39 = vsel %vm342_vm0, %v678_v36, 0  ;;  %v588_v40 = vsel %vm342_vm0, %v582_v37, 0 }
 0x126   : > { %v689_v41 = vsel %vm342_vm0, %v681_v38, 0  ;;  %603 = vmatpush.bf16.msra.mxu1 %v588_v40  ;;  %727 = vmatpush.bf16.msrb.mxu2 %v692_v39 }
 0x129   : > { %1319 = vmatmul.msk.bf16.vlgmr.msra.gmra.mxu1 %vm338_vm1, %v1318_v42  ;;  %1320 = vmatmul.msk.bf16.vlgmr.msra.gmra.mxu2 %vm338_vm1, %v1318_v42 }
 0x12a   : > { %714 = vmatpush.bf16.msrb.mxu1 %v689_v41 }
 0x12b   : > { %v674_v45 = vpop.permute.xlu1 %673 }
 0x12c   : > { %1131 = vperm.xlu0 %1371, %v1128_v44   ;;  %v772_v46 = vpop.permute.xlu0 %771  ;;  %v680_v47 = vsel %vm679_vm5, %v674_v45, %v676_v26  ;;  %v874_v49 = vpop.permute.xlu2 %873  ;;  %vm1210_vm5 = vmor %vm1209_vm3, %vm1208_vm2 }
 0x12d   : > { %v686_v48 = vsel %vm342_vm0, %v680_v47, 0  ;;  %v888_v5 = vsel %vm342_vm0, %v874_v49, 0 }
 0x12e   : > { %701 = vmatpush.bf16.msrb.mxu0 %v686_v48 }
 0x131   : > { %1316 = vmatmul.msk.bf16.vlgmr.msra.gmra.mxu0 %vm338_vm1, %v1313_v16  ;;  %1321 = vmatmul.msk.bf16.vlgmr.msra.gmra.mxu3 %vm338_vm1, %v1318_v42 }
 0x133   : > { %v774_v50 = vpop.permute.xlu1 %773 }
 0x134   : > { %v872_v51 = vpop.permute.xlu0 %871  ;;  %v778_v52 = vsel %vm777_vm6, %v772_v46, %v774_v50  ;;  %v968_v60 = vpop.permute.xlu2 %967 }
 0x135   : > { %v876_v53 = vsel %vm875_vm7, %v870_v43, %v872_v51  ;;  %v877_v54 = vsel %vm875_vm7, %v872_v51, %v874_v49  ;;  %v784_v55 = vsel %vm342_vm0, %v778_v52, 0  ;;  %vm1214_vm7 = vcmask 699800  }
 0x136   : > { %v882_v56 = vsel %vm342_vm0, %v876_v53, 0  ;;  %v885_v57 = vsel %vm342_vm0, %v877_v54, 0  ;;  %799 = vmatpush.bf16.msrb.mxu3 %v784_v55 }
 0x137   : > { %897 = vmatpush.bf16.msra.mxu2 %v882_v56 }
 0x139   : > { %1325 = vmatmul.msk.bf16.vlgmr.msrb.gmra.mxu1 %vm338_vm1, %v1323_v58  ;;  %1326 = vmatmul.msk.bf16.vlgmr.msrb.gmra.mxu2 %vm338_vm1, %v1323_v58 }
 0x13a   : > { %910 = vmatpush.bf16.msra.mxu3 %v885_v57 }
 0x13b   : > { %v776_v59 = vpop.permute.xlu1 %775 }
 0x13c   : > { %v970_v61 = vpop.permute.xlu0 %969  ;;  %v779_v62 = vsel %vm777_vm6, %v774_v50, %v776_v59  ;;  %v790_v63 = vsel %vm342_vm0, %v776_v59, 0  ;;  %vm1212_vm6 = vcmask 412672  }
 0x13d   : > { %v974_v1 = vsel %vm973_vm8, %v968_v60, %v970_v61  ;;  %v787_v2 = vsel %vm342_vm0, %v779_v62, 0  ;;  %825 = vmatpush.bf16.msra.mxu1 %v790_v63 }
 0x13e   : > { %v980_v3 = vsel %vm342_vm0, %v974_v1, 0  ;;  %812 = vmatpush.bf16.msra.mxu0 %v787_v2 }
 0x141   : > { %995 = vmatpush.bf16.msrb.mxu1 %v980_v3  ;;  %1324 = vmatmul.msk.bf16.vlgmr.msrb.gmra.mxu0 %vm338_vm1, %v1323_v58 }
 0x142   : > { %1329 = vmatmul.msk.bf16.vlgmr.msrb.gmra.mxu3 %vm338_vm1, %v1328_v4  ;;  %923 = vmatpush.bf16.msrb.mxu0 %v888_v5 }
 0x143   : > { %v972_v6 = vpop.permute.xlu1 %971 }
 0x144   : > { %v975_v30 = vsel %vm973_vm8, %v970_v61, %v972_v6  ;;  %v986_v7 = vsel %vm342_vm0, %v972_v6, 0 }
 0x145   : > { %v983_v8 = vsel %vm342_vm0, %v975_v30, 0  ;;  %1021 = vmatpush.bf16.msrb.mxu3 %v986_v7 }
 0x146   : > { %1008 = vmatpush.bf16.msrb.mxu2 %v983_v8 }
 0x149   : > { %1331 = vmatmul.msk.bf16.vlgmr.msra.gmra.mxu1 %vm338_vm1, %v1328_v4  ;;  %1334 = vmatmul.msk.bf16.vlgmr.msra.gmra.mxu2 %vm338_vm1, %v1333_v9 }
 0x151   : > { %1330 = vmatmul.msk.bf16.vlgmr.msra.gmra.mxu0 %vm338_vm1, %v1328_v4 }
 0x152   : > { %1335 = vmatmul.msk.bf16.vlgmr.msra.gmra.mxu3 %vm338_vm1, %v1333_v9 }
 0x159   : > { %1339 = vmatmul.msk.bf16.vlgmr.msrb.gmra.mxu1 %vm338_vm1, %v1338_v10  ;;  %1340 = vmatmul.msk.bf16.vlgmr.msrb.gmra.mxu2 %vm338_vm1, %v1338_v10 }
 0x161   : > { %1336 = vmatmul.msk.bf16.vlgmr.msrb.gmra.mxu0 %vm338_vm1, %v1333_v9 }
 0x162   : > { %1341 = vmatmul.msk.bf16.vlgmr.msrb.gmra.mxu3 %vm338_vm1, %v1338_v10 }
 0x17c   : > { %v387_v13 = vpop.f32.mrf.mxu2 }
 0x17d   : > { %v1068_v21 = vpop.permute.xlu2 %1067 }
 0x17f   : > { %v374_v14 = vpop.f32.mrf.mxu1 }
 0x184   : > { %v389_v15 = vpop.f32.mrf.mxu2 }
 0x187   : > { %v376_v16 = vpop.f32.mrf.mxu1 }
 0x18e   : > { %v361_v17 = vpop.f32.mrf.mxu0 }
 0x18f   : > { %v413_v18 = vadd.f32 %v412_v11, %v361_v17  ;;  %v438_v19 = vpop.f32.mrf.mxu1 }
 0x190   : > { %v439_v20 = vadd.f32 %v438_v19, %v387_v13 }
 0x195   : > { %v1066_v12 = vpop.permute.xlu1 %1065 }
 0x196   : > { %v1070_v22 = vpop.permute.xlu0 %1069  ;;  %v1072_v23 = vsel %vm1071_vm9, %v1066_v12, %v1068_v21  ;;  %v363_v24 = vpop.f32.mrf.mxu0 }
 0x197   : > { %v1073_v25 = vsel %vm1071_vm9, %v1068_v21, %v1070_v22  ;;  %v1084_v26 = vsel %vm342_vm0, %v1070_v22, 0  ;;  %v1078_v27 = vsel %vm342_vm0, %v1072_v23, 0  ;;  %v440_v28 = vpop.f32.mrf.mxu1  ;;  %v263_v24 = vld [vmem:[%s1607_s2] sm:$0x7] }
 0x198   : > { %v1081_v31 = vsel %vm342_vm0, %v1073_v25, 0  ;;  %1119 = vmatpush.bf16.msra.mxu2 %v1084_v26  ;;  %1093 = vmatpush.bf16.msra.mxu0 %v1078_v27 }
 0x199   : > { %1106 = vmatpush.bf16.msra.mxu1 %v1081_v31 }
 0x19b   : > { %1346 = vmatmul.msk.bf16.vlgmr.msra.gmra.mxu2 %vm338_vm1, %v1343_v32  ;;  %1344 = vmatmul.msk.bf16.vlgmr.msra.gmra.mxu0 %vm338_vm1, %v1343_v32 }
 0x19c   : > { %1345 = vmatmul.msk.bf16.vlgmr.msra.gmra.mxu1 %vm338_vm1, %v1343_v32  ;;  %v507_v33 = vpop.f32.mrf.mxu2 }
 0x19d   : > { %v537_v34 = vadd.f32 %v507_v33, %v413_v18  ;;  %v1138_v33 = vperm.slane %v263_v24, 0 }
 0x19e   : > { %v425_v35 = vpop.f32.mrf.mxu0  ;;  %v1132_v28 = vpop.permute.xlu0 %1131 }
 0x19f   : > { %v426_v36 = vadd.f32 %v425_v35, %v374_v14  ;;  %v1139_v35 = vperm.slane %v263_v24, 1 }
 0x1a4   : > { %v509_v37 = vpop.f32.mrf.mxu2  ;;  %v520_v38 = vpop.f32.mrf.mxu3 }
 0x1a5   : > { %v538_v39 = vadd.f32 %v520_v38, %v426_v36 }
 0x1a6   : > { %v427_v40 = vpop.f32.mrf.mxu0  ;;  %v605_v41 = vpop.f32.mrf.mxu1 }
 0x1a7   : > { %v635_v42 = vadd.f32 %v605_v41, %v537_v34 }
 0x1ac   : > { %v522_v43 = vpop.f32.mrf.mxu3  ;;  %v618_v44 = vpop.f32.mrf.mxu2 }
 0x1ad   : > { %v636_v45 = vadd.f32 %v618_v44, %v538_v39  ;;  %v1140_v39 = vperm.slane %v263_v24, 2 }
 0x1ae   : > { %v533_v46 = vpop.f32.mrf.mxu0  ;;  %v607_v47 = vpop.f32.mrf.mxu1 }
 0x1af   : > { %v539_v48 = vadd.f32 %v533_v46, %v439_v20 }
 0x1b4   : > { %v620_v49 = vpop.f32.mrf.mxu2  ;;  %v631_v50 = vpop.f32.mrf.mxu3 }
 0x1b5   : > { %v637_v51 = vadd.f32 %v631_v50, %v539_v48 }
 0x1b6   : > { %v535_v52 = vpop.f32.mrf.mxu0  ;;  %v716_v53 = vpop.f32.mrf.mxu1 }
 0x1b7   : > { %v734_v54 = vadd.f32 %v716_v53, %v636_v45 }
 0x1bc   : > { %v633_v55 = vpop.f32.mrf.mxu3  ;;  %v729_v56 = vpop.f32.mrf.mxu2 }
 0x1bd   : > { %v735_v57 = vadd.f32 %v729_v56, %v637_v51 }
 0x1be   : > { %v703_v58 = vpop.f32.mrf.mxu0  ;;  %v718_v59 = vpop.f32.mrf.mxu1 }
 0x1bf   : > { %v733_v60 = vadd.f32 %v703_v58, %v635_v42 }
 0x1c4   : > { %v731_v61 = vpop.f32.mrf.mxu2 }
 0x1c5   : > { %v801_v62 = vpop.f32.mrf.mxu3 }
 0x1c6   : > { %v831_v63 = vadd.f32 %v801_v62, %v733_v60  ;;  %v705_v1 = vpop.f32.mrf.mxu0  ;;  %v827_v2 = vpop.f32.mrf.mxu1 }
 0x1c7   : > { %v833_v3 = vadd.f32 %v827_v2, %v735_v57 }
 0x1cc   : > { %v899_v5 = vpop.f32.mrf.mxu2 }
 0x1cd   : > { %v803_v4 = vpop.f32.mrf.mxu3  ;;  %v929_v6 = vadd.f32 %v899_v5, %v831_v63 }
 0x1ce   : > { %v814_v30 = vpop.f32.mrf.mxu0  ;;  %v829_v7 = vpop.f32.mrf.mxu1 }
 0x1cf   : > { %v832_v8 = vadd.f32 %v814_v30, %v734_v54 }
 0x1d4   : > { %v901_v9 = vpop.f32.mrf.mxu2 }
 0x1d5   : > { %v912_v10 = vpop.f32.mrf.mxu3 }
 0x1d6   : > { %v930_v11 = vadd.f32 %v912_v10, %v832_v8  ;;  %v816_v13 = vpop.f32.mrf.mxu0  ;;  %v997_v29 = vpop.f32.mrf.mxu1 }
 0x1d7   : > { %v1027_v14 = vadd.f32 %v997_v29, %v929_v6 }
 0x1dc   : > { %v1010_v16 = vpop.f32.mrf.mxu2 }
 0x1dd   : > { %v914_v15 = vpop.f32.mrf.mxu3  ;;  %v1028_v22 = vadd.f32 %v1010_v16, %v930_v11 }
 0x1de   : > { %v925_v17 = vpop.f32.mrf.mxu0  ;;  %v999_v18 = vpop.f32.mrf.mxu1 }
 0x1df   : > { %v931_v31 = vadd.f32 %v925_v17, %v833_v3 }
 0x1e4   : > { %v1012_v20 = vpop.f32.mrf.mxu2 }
 0x1e5   : > { %v1023_v19 = vpop.f32.mrf.mxu3 }
 0x1e6   : > { %v927_v21 = vpop.f32.mrf.mxu0  ;;  %v1029_v36 = vadd.f32 %v1023_v19, %v931_v31 }
 0x1ed   : > { %v1025_v12 = vpop.f32.mrf.mxu3 }
 0x218   : > { %v1095_v23 = vpop.f32.mrf.mxu0 }
 0x219   : > { %v1125_v25 = vadd.f32 %v1095_v23, %v1027_v14  ;;  %v1108_v26 = vpop.f32.mrf.mxu1 }
 0x21a   : > { %v1126_v27 = vadd.f32 %v1108_v26, %v1028_v22 }
 0x21b   : > { %v1134_v32 = vmul.f32 %v1132_v28, %v1125_v25 }
 0x21c   : > { %v1135_v34 = vmul.f32 %v1132_v28, %v1126_v27 }
 0x21d   : > { %v1144_v40 = vmul.f32 %v1138_v33, %v1134_v32 }
 0x21e   : > { %v1121_v37 = vpop.f32.mrf.mxu2  ;;  %v1145_v41 = vmul.f32 %v1139_v35, %v1135_v34 }
 0x21f   : > { %v1127_v38 = vadd.f32 %v1121_v37, %v1029_v36 }
 0x220   : > { %v1097_v42 = vpop.f32.mrf.mxu0  ;;  %v1147_v46 = vadd.f32 %v1145_v41, %v1144_v40 }
 0x221   : > { %v1136_v43 = vmul.f32 %v1132_v28, %v1127_v38  ;;  %v1110_v44 = vpop.f32.mrf.mxu1 }
 0x223   : > { %v1146_v45 = vmul.f32 %v1140_v39, %v1136_v43 }
 0x225   : > { %v1149_v47 = vsel %vm1148_vm10, %v1146_v45, 0.0 }
 0x226   : > { %v1150_v48 = vadd.f32 %v1149_v47, %v1147_v46  ;;  %v1123_v49 = vpop.f32.mrf.mxu2 }
 0x228   : > { %1151 = vadd.xlane.f32.xlu1 %v1150_v48 }
 0x29b   : > { %v1152_v50 = vpop.xlane.xlu1 %1151 }
 0x29c   : > { %v1153_v51 = vmul.f32 0.00390625, %v1152_v50 }
 0x29e   : > { %v1154_v52 = vsub.f32 %v1134_v32, %v1153_v51  ;;  %v1155_v53 = vsub.f32 %v1135_v34, %v1153_v51  ;;  %v1156_v54 = vsub.f32 %v1136_v43, %v1153_v51 }
 0x2a0   : > { %v1157_v55 = vmul.f32 %v1154_v52, %v1138_v33  ;;  %v1158_v56 = vmul.f32 %v1155_v53, %v1139_v35  ;;  %v1159_v57 = vmul.f32 %v1156_v54, %v1140_v39 }
 0x2a2   : > { %v1160_v58 = vmul.f32 %v1157_v55, %v1157_v55  ;;  %v1161_v59 = vmul.f32 %v1158_v56, %v1158_v56  ;;  %v1162_v60 = vmul.f32 %v1159_v57, %v1159_v57 }
 0x2a4   : > { %v1163_v61 = vadd.f32 %v1161_v59, %v1160_v58  ;;  %v1164_v62 = vsel %vm1148_vm10, %v1162_v60, 0.0 }
 0x2a6   : > { %v1165_v63 = vadd.f32 %v1164_v62, %v1163_v61 }
 0x2a8   : > { %1166 = vadd.xlane.f32.xlu2 %v1165_v63 }
 0x31b   : > { %v1167_v1 = vpop.xlane.xlu2 %1166 }
 0x31c   : > { %v1168_v2 = vmul.f32 0.00390625, %v1167_v1 }
 0x31e   : > { %v1169_v3 = vadd.f32 1e-05, %v1168_v2 }
 0x320   : > { %1374 = vrsqrt.f32 %v1169_v3  ;;  %vm1176_vm13 = vweird.f32 %v1169_v3 }
 0x326   : > { %v1375_v4 = vpop.eup %1374 }
 0x327   : > { %v1171_v5 = vmul.f32 %v1375_v4, %v1169_v3  ;;  %vm1177_vm12 = vweird.f32 %v1375_v4 }
 0x328   : > { %vm1178_vm14 = vmor %vm1176_vm13, %vm1177_vm12 }
 0x329   : > { %v1172_v6 = vmul.f32 %v1375_v4, %v1171_v5 }
 0x32b   : > { %v1173_v30 = vmul.f32 0.5, %v1172_v6 }
 0x32d   : > { %v1174_v7 = vsub.f32 1.5, %v1173_v30 }
 0x32f   : > { %v1175_v8 = vmul.f32 %v1375_v4, %v1174_v7 }
 0x331   : > { %v1179_v9 = vsel %vm1178_vm14, %v1375_v4, %v1175_v8 }
 0x332   : > { %v1180_v10 = vmul.f32 %v1179_v9, %v1157_v55  ;;  %v1181_v11 = vmul.f32 %v1179_v9, %v1158_v56  ;;  %v1182_v13 = vmul.f32 %v1179_v9, %v1159_v57 }
 0x334   : > { %vm1183_vm15 = vcmp.gt.f32.partialorder %v1180_v10, 0.0  ;;  %vm1184_vm0 = vcmp.gt.f32.partialorder %v1181_v11, 0.0  ;;  %v1186_v29 = vmul.f32 0.01, %v1180_v10  ;;  %v1187_v14 = vmul.f32 0.01, %v1181_v11 }
 0x335   : > { %v1188_v18 = vmul.f32 0.01, %v1182_v13  ;;  %vm1185_vm1 = vcmp.gt.f32.partialorder %v1182_v13, 0.0 }
 0x336   : > { %v1189_v15 = vsel %vm1183_vm15, %v1180_v10, %v1186_v29  ;;  %v1190_v16 = vsel %vm1184_vm0, %v1181_v11, %v1187_v14 }
 0x337   : > { %v1194_v17 = vpack.c.bf16 %v1190_v16, %v1189_v15  ;;  %v1191_v19 = vsel %vm1185_vm1, %v1182_v13, %v1188_v18 }
 0x338   : > { %v1195_v20 = vpack.c.bf16 %v1191_v19, %v1191_v19 }
 0x339   : > { %1198 = vrot.lane.b32.xlu0 %v1194_v17, %s1394_s19 }
 0x341   : > { %1200 = vrot.lane.b32.xlu0 %v1195_v20, %s1394_s19 }
 0x3ab   : > { %v1199_v21 = vpop.permute.xlu0 %1198 }
 0x3ac   : > { %v1202_v12 = vrot.slane %v1199_v21, 4 }
 0x3ae   : > { %v1204_v22 = vsel %vm1203_vm4, %v1202_v12, %v1199_v21 }
 0x3af   : > { %1211 = vst.msk [vmem:[%s1594_s15] sm:$0xff] %vm1210_vm5, %v1204_v22 }
 0x3b3   : > { %v1201_v23 = vpop.permute.xlu0 %1200 }
 0x3b4   : > { %v1205_v24 = vsel %vm1203_vm4, %v1202_v12, %v1201_v23 }
 0x3b5   : > { %1213 = vst.msk [vmem:[%s1594_s15 + $0x8] sm:$0xf] %vm1212_vm6, %v1205_v24 }
 0x3b6   : > { %1215 = vst.msk [vmem:[%s1594_s15 + $0x8] sm:$0xf] %vm1214_vm7, %v1384_v0 }
 0x3b7 PF: > { %s15_s18 = sadd.s32 1, %s1382_s18  }
 0x3b8   : > { %p12_p4 = scmp.ge.s32.totalorder %s15_s18, 4  }
 0x3ba   :  { %14 = sbr.rel (!%p12_p4) target bundleno = 1 (0x1), region = 101 }

</bundles_post_ra>
